<compile_context>
chip_gen: v7x
topology: tpu7x:2x2x1
jax: 0.10.0
libtpu: 0.0.40
codegen_flags: <defaults>
</compile_context>

<pallas_src>
import jax
import jax.numpy as jnp
import numpy as np
from jax.experimental import pallas as pl
from jax.experimental.pallas import tpu as pltpu


# ----------------------------------------------------------------------------
# Kernel
# ----------------------------------------------------------------------------
def mlp_diffusion_kernel(x_ref, t_ref, emb_ref,
                         w0_ref, w1_ref, w2_ref, wo_ref, bo_ref,
                         out_ref):
    """One batch tile per grid step.

    x_ref   : (TB, Dp)  bf16   input rows
    t_ref   : (TB, 1)   int32  diffusion-step indices
    emb_ref : (Sp, 3H)  f32    fused table [emb0+b0 | emb1+b1 | emb2+b2]
    w*_ref  : bf16 weights stored (in_dim, out_dim); bo_ref (1, Dp) f32
    out_ref : (TB, Dp)  f32 or bf16
    """
    tb = x_ref.shape[0]
    sp = emb_ref.shape[0]
    H = w0_ref.shape[1]

    # One-hot over (padded) steps -> ONE fused lookup for all three layers.
    t_col = t_ref[...]                                            # (TB, 1) i32
    step_ids = jax.lax.broadcasted_iota(jnp.int32, (tb, sp), 1)   # lane iota
    onehot = (step_ids == t_col).astype(jnp.float32)              # (TB, Sp)
    # (TB, Sp) x (Sp, 3H): exact f32 gather of emb[layer][t] + b[layer].
    temb = jnp.dot(onehot, emb_ref[...], preferred_element_type=jnp.float32)

    # block 0: Linear(input_dim -> H); += b0 + emb0[t]; ReLU
    h = jnp.dot(x_ref[...], w0_ref[...], preferred_element_type=jnp.float32)
    h = jnp.maximum(h + temb[:, :H], 0.0)

    # block 1: Linear(H -> H); += b1 + emb1[t]; ReLU
    h = jnp.dot(h.astype(jnp.bfloat16), w1_ref[...],
                preferred_element_type=jnp.float32)
    h = jnp.maximum(h + temb[:, H:2 * H], 0.0)

    # block 2: Linear(H -> H); += b2 + emb2[t]; ReLU
    h = jnp.dot(h.astype(jnp.bfloat16), w2_ref[...],
                preferred_element_type=jnp.float32)
    h = jnp.maximum(h + temb[:, 2 * H:3 * H], 0.0)

    # output Linear(H -> input_dim)
    y = jnp.dot(h.astype(jnp.bfloat16), wo_ref[...],
                preferred_element_type=jnp.float32) + bo_ref[...]
    out_ref[...] = y.astype(out_ref.dtype)


# ----------------------------------------------------------------------------
# Wrapper
# ----------------------------------------------------------------------------
def _round_up(v, m):
    return ((v + m - 1) // m) * m


def _pad_to(a, shape):
    return jnp.pad(a, [(0, s - d) for d, s in zip(a.shape, shape)])


def _resident_spec(shape):
    """Constant-index (VMEM-resident) block.  Buffered(1): a block whose index
    never changes gains nothing from double buffering, so don't pay 2x VMEM."""
    n = len(shape)

    def index_map(i):
        return (0,) * n

    if hasattr(pl, "Buffered"):
        try:
            return pl.BlockSpec(shape, index_map, pipeline_mode=pl.Buffered(1))
        except Exception:   # pipeline_mode / Buffered(1) unsupported -> default
            pass
    return pl.BlockSpec(shape, index_map)


def mlp_diffusion_forward(x, t, params, *, batch_tile=2048, out_dtype=jnp.float32):
    """x: (B, input_dim) f32, t: (B,) int32 diffusion-step indices.

    NOTE: out-of-range t (t >= n_steps) silently contributes a zero
    time-embedding row instead of raising like PyTorch's nn.Embedding.
    """
    B, D = x.shape
    n_emb, n_steps, H = params["emb"].shape
    assert n_emb == 3, "forward uses exactly depth-1 == 3 embedding layers"
    assert H % 128 == 0, "num_units must be a multiple of 128 for this kernel"

    Dp = _round_up(D, 128)           # feature dim -> lane multiple
    Sp = _round_up(n_steps, 8)       # steps only need sublane (8) alignment
    out_bytes = np.dtype(out_dtype).itemsize

    # ---- batch tiling --------------------------------------------------------
    # Big tiles amortize per-grid-step overhead; clamp so the per-tile working
    # set (resident weights + temb/h intermediates + double-buffered I/O tiles)
    # stays well under v7x's 64 MiB VMEM.
    weight_bytes = (Dp * H + 2 * H * H + H * Dp) * 2 + Dp * 4 + Sp * 3 * H * 4
    per_row_bytes = ((3 * H + H) * 4                                # temb + h (f32)
                     + (Dp + H) * 2                                 # bf16 row copies
                     + 2 * (Dp * 2 + 128 * 4 + Dp * out_bytes))     # 2x-buffered x/t/out
    budget = (40 << 20) - weight_bytes
    max_tb = max(32, (budget // max(per_row_bytes, 1)) // 32 * 32)
    batch_tile = int(min(batch_tile, max_tb))

    B32 = _round_up(B, 32)           # 32-row granularity: clean bf16 packing
    grid_n = max(1, pl.cdiv(B32, batch_tile))
    if grid_n == 1 and B32 >= 64:
        grid_n = 2                   # give both v7x TensorCores work
    TB = _round_up(pl.cdiv(B32, grid_n), 32)
    Bp = grid_n * TB

    bf16, f32 = jnp.bfloat16, jnp.float32

    # ---- operand packing -----------------------------------------------------
    x_p = _pad_to(x, (Bp, Dp)).astype(bf16)
    t_p = _pad_to(t.reshape(B, 1).astype(jnp.int32), (Bp, 1))   # pad rows -> step 0
    # Fused lookup table [emb0+b0 | emb1+b1 | emb2+b2] along N, kept in f32 so
    # the bias + embedding add retains full f32 precision.
    emb_b = jnp.concatenate(
        [params["emb"][i] + params[f"b{i}"].reshape(1, H) for i in range(3)],
        axis=1)
    emb_p = _pad_to(emb_b, (Sp, 3 * H)).astype(f32)
    w0_p = _pad_to(params["w0"], (Dp, H)).astype(bf16)   # padded rows meet zero x cols
    w1 = params["w1"].astype(bf16)
    w2 = params["w2"].astype(bf16)
    wo_p = _pad_to(params["wo"], (H, Dp)).astype(bf16)
    bo_p = _pad_to(params["bo"].reshape(1, D), (1, Dp)).astype(f32)

    in_specs = [
        pl.BlockSpec((TB, Dp), lambda i: (i, 0)),   # x tile (pipelined)
        pl.BlockSpec((TB, 1), lambda i: (i, 0)),    # t tile (pipelined)
        _resident_spec((Sp, 3 * H)),                # fused emb+bias table
        _resident_spec((Dp, H)),                    # w0
        _resident_spec((H, H)),                     # w1
        _resident_spec((H, H)),                     # w2
        _resident_spec((H, Dp)),                    # wo
        _resident_spec((1, Dp)),                    # bo
    ]
    out_spec = pl.BlockSpec((TB, Dp), lambda i: (i, 0))

    vmem_limit = int(min(64 << 20,
                         max(32 << 20,
                             weight_bytes + TB * per_row_bytes + (4 << 20))))

    flops = 2 * Bp * (Dp * H + 2 * H * H + H * Dp + Sp * 3 * H)
    bytes_accessed = Bp * Dp * 2 + Bp * 4 + Bp * Dp * out_bytes + weight_bytes

    out = pl.pallas_call(
        mlp_diffusion_kernel,
        out_shape=jax.ShapeDtypeStruct((Bp, Dp), out_dtype),
        grid=(grid_n,),
        in_specs=in_specs,
        out_specs=out_spec,
        compiler_params=pltpu.CompilerParams(
            dimension_semantics=("parallel",),   # megacore sharding on v7x
            vmem_limit_bytes=vmem_limit,
        ),
        cost_estimate=pl.CostEstimate(flops=int(flops), transcendentals=0,
                                      bytes_accessed=int(bytes_accessed)),
    )(x_p, t_p, emb_p, w0_p, w1, w2, wo_p, bo_p)

    return out[:B, :D]


# ----------------------------------------------------------------------------
# Params + references
# ----------------------------------------------------------------------------
def make_params(key, n_steps, input_dim, num_units):
    """Deterministic synthetic init (PyTorch-style U(-1/sqrt(fan_in), ..) for
    Linear, N(0,1) for Embedding)."""
    ks = jax.random.split(key, 12)

    def lin(kw, kb, fan_in, fan_out):
        bound = 1.0 / np.sqrt(fan_in)
        w = jax.random.uniform(kw, (fan_in, fan_out), jnp.float32, -bound, bound)
        b = jax.random.uniform(kb, (fan_out,), jnp.float32, -bound, bound)
        return w, b

    w0, b0 = lin(ks[0], ks[1], input_dim, num_units)
    w1, b1 = lin(ks[2], ks[3], num_units, num_units)
    w2, b2 = lin(ks[4], ks[5], num_units, num_units)
    wo, bo = lin(ks[6], ks[7], num_units, input_dim)
    emb = jax.random.normal(ks[8], (3, n_steps, num_units), jnp.float32)
    return dict(w0=w0, b0=b0, w1=w1, b1=b1, w2=w2, b2=b2, wo=wo, bo=bo, emb=emb)


def reference_forward(x, t, p):
    """Pure-JAX f32 reference mirroring the PyTorch forward."""
    h = x
    ws = [p["w0"], p["w1"], p["w2"]]
    bs = [p["b0"], p["b1"], p["b2"]]
    for i in range(3):
        h = h @ ws[i] + bs[i]
        h = h + p["emb"][i][t]
        h = jnp.maximum(h, 0.0)
    return h @ p["wo"] + p["bo"]


def reference_forward_bf16(x, t, p):
    """Mirrors the kernel's precision: bf16 GEMM operands, f32 accumulation,
    f32 bias + time-embedding add (the fused lookup table stays f32)."""
    bf16, f32 = jnp.bfloat16, jnp.float32
    h = x.astype(bf16)
    for i in range(3):
        y = jnp.dot(h, p[f"w{i}"].astype(bf16), preferred_element_type=f32)
        y = y + (p["emb"][i] + p[f"b{i}"].reshape(1, -1))[t]
        h = jnp.maximum(y, 0.0).astype(bf16)
    return jnp.dot(h, p["wo"].astype(bf16), preferred_element_type=f32) + p["bo"]


# ----------------------------------------------------------------------------
# Test
# ----------------------------------------------------------------------------
if __name__ == "__main__":
    n_steps, input_dim, num_units = 16, 23, 128   # small but module-consistent
    B = 300                                       # -> two 160-row batch tiles

    key = jax.random.PRNGKey(0)
    k_params, k_x, k_t = jax.random.split(key, 3)
    params = make_params(k_params, n_steps, input_dim, num_units)
    x = jax.random.normal(k_x, (B, input_dim), jnp.float32)
    t = jax.random.randint(k_t, (B,), 0, n_steps, jnp.int32)

    out = jax.block_until_ready(mlp_diffusion_forward(x, t, params))
    assert out.shape == (B, input_dim) and out.dtype == jnp.float32

    # Tight check vs a reference that mirrors the kernel's bf16-GEMM precision.
    ref_bf16 = reference_forward_bf16(x, t, params)
    np.testing.assert_allclose(np.asarray(out), np.asarray(ref_bf16),
                               rtol=5e-3, atol=5e-3)
    # Loose sanity check vs the full-f32 PyTorch-equivalent forward.
    ref_f32 = reference_forward(x, t, params)
    np.testing.assert_allclose(np.asarray(out), np.asarray(ref_f32),
                               rtol=1e-1, atol=1e-1)

    # bf16-output path (halves HBM writeback bytes).
    out_bf16 = jax.block_until_ready(
        mlp_diffusion_forward(x, t, params, out_dtype=jnp.bfloat16))
    assert out_bf16.dtype == jnp.bfloat16
    np.testing.assert_allclose(np.asarray(out_bf16.astype(jnp.float32)),
                               np.asarray(ref_bf16), rtol=2e-2, atol=2e-2)

    # Tiny non-tile-aligned batch exercises clamping / padding.
    B2 = 20
    x2 = jax.random.normal(jax.random.PRNGKey(1), (B2, input_dim), jnp.float32)
    t2 = jax.random.randint(jax.random.PRNGKey(2), (B2,), 0, n_steps, jnp.int32)
    out2 = jax.block_until_ready(mlp_diffusion_forward(x2, t2, params))
    np.testing.assert_allclose(np.asarray(out2),
                               np.asarray(reference_forward_bf16(x2, t2, params)),
                               rtol=5e-3, atol=5e-3)

    print("KERNEL_OK")
</pallas_src>

<mosaic_0001>
module attributes {stable_mosaic.version = 11 : i64} {
  func.func @mlp_diffusion_kernel(%arg0: i32, %arg1: memref<160x128xbf16, #tpu.memory_space<vmem>>, %arg2: memref<160x1xi32, #tpu.memory_space<vmem>>, %arg3: memref<16x384xf32, #tpu.memory_space<vmem>>, %arg4: memref<128x128xbf16, #tpu.memory_space<vmem>>, %arg5: memref<128x128xbf16, #tpu.memory_space<vmem>>, %arg6: memref<128x128xbf16, #tpu.memory_space<vmem>>, %arg7: memref<128x128xbf16, #tpu.memory_space<vmem>>, %arg8: memref<1x128xf32, #tpu.memory_space<vmem>>, %arg9: memref<160x128xf32, #tpu.memory_space<vmem>>) attributes {dimension_semantics = [#tpu.dimension_semantics<parallel>], iteration_bounds = array<i64: 2>, scalar_prefetch = 0 : i64, scratch_operands = 0 : i64, tpu.core_type = #tpu.core_type<tc>, window_params = [{transform_indices = @transform_0, window_bounds = array<i64: 160, 128>}, {transform_indices = @transform_1, window_bounds = array<i64: 160, 1>}, {pipeline_mode = #tpu.pipeline_mode<synchronous>, transform_indices = @transform_2, window_bounds = array<i64: 16, 384>}, {pipeline_mode = #tpu.pipeline_mode<synchronous>, transform_indices = @transform_3, window_bounds = array<i64: 128, 128>}, {pipeline_mode = #tpu.pipeline_mode<synchronous>, transform_indices = @transform_4, window_bounds = array<i64: 128, 128>}, {pipeline_mode = #tpu.pipeline_mode<synchronous>, transform_indices = @transform_5, window_bounds = array<i64: 128, 128>}, {pipeline_mode = #tpu.pipeline_mode<synchronous>, transform_indices = @transform_6, window_bounds = array<i64: 128, 128>}, {pipeline_mode = #tpu.pipeline_mode<synchronous>, transform_indices = @transform_7, window_bounds = array<i64: 1, 128>}, {transform_indices = @transform_8, window_bounds = array<i64: 160, 128>}]} {
    %c0 = arith.constant 0 : index
    %c0_0 = arith.constant 0 : index
    %0 = vector.load %arg2[%c0, %c0_0] : memref<160x1xi32, #tpu.memory_space<vmem>>, vector<160x1xi32>
    %1 = tpu.iota {dimensions = array<i32: 1>} : vector<160x16xi32>
    %2 = vector.broadcast %0 : vector<160x1xi32> to vector<160x16xi32>
    %3 = arith.cmpi eq, %1, %2 : vector<160x16xi32>
    %4 = arith.extui %3 : vector<160x16xi1> to vector<160x16xi32>
    %5 = arith.sitofp %4 : vector<160x16xi32> to vector<160x16xf32>
    %c0_1 = arith.constant 0 : index
    %c0_2 = arith.constant 0 : index
    %6 = vector.load %arg3[%c0_1, %c0_2] : memref<16x384xf32, #tpu.memory_space<vmem>>, vector<16x384xf32>
    %cst = arith.constant dense<0.000000e+00> : vector<160x384xf32>
    %7 = tpu.matmul %5, %6, %cst {dimension_numbers = #tpu.dot_dimension_numbers<[1], [0], [0], [1], [0, 0, 1, 1], [], []>} : vector<160x16xf32>, vector<16x384xf32>, vector<160x384xf32> -> vector<160x384xf32>
    %c0_3 = arith.constant 0 : index
    %c0_4 = arith.constant 0 : index
    %8 = vector.load %arg1[%c0_3, %c0_4] : memref<160x128xbf16, #tpu.memory_space<vmem>>, vector<160x128xbf16>
    %c0_5 = arith.constant 0 : index
    %c0_6 = arith.constant 0 : index
    %9 = vector.load %arg4[%c0_5, %c0_6] : memref<128x128xbf16, #tpu.memory_space<vmem>>, vector<128x128xbf16>
    %cst_7 = arith.constant dense<0.000000e+00> : vector<160x128xf32>
    %10 = tpu.matmul %8, %9, %cst_7 {dimension_numbers = #tpu.dot_dimension_numbers<[1], [0], [0], [1], [0, 0, 1, 1], [], []>} : vector<160x128xbf16>, vector<128x128xbf16>, vector<160x128xf32> -> vector<160x128xf32>
    %11 = vector.extract_strided_slice %7 {offsets = [0, 0], sizes = [160, 128], strides = [1, 1]} : vector<160x384xf32> to vector<160x128xf32>
    %12 = arith.addf %10, %11 : vector<160x128xf32>
    %cst_8 = arith.constant 0.000000e+00 : f32
    %13 = vector.broadcast %cst_8 : f32 to vector<160x128xf32>
    %14 = arith.maximumf %12, %13 : vector<160x128xf32>
    %15 = arith.truncf %14 : vector<160x128xf32> to vector<160x128xbf16>
    %c0_9 = arith.constant 0 : index
    %c0_10 = arith.constant 0 : index
    %16 = vector.load %arg5[%c0_9, %c0_10] : memref<128x128xbf16, #tpu.memory_space<vmem>>, vector<128x128xbf16>
    %cst_11 = arith.constant dense<0.000000e+00> : vector<160x128xf32>
    %17 = tpu.matmul %15, %16, %cst_11 {dimension_numbers = #tpu.dot_dimension_numbers<[1], [0], [0], [1], [0, 0, 1, 1], [], []>} : vector<160x128xbf16>, vector<128x128xbf16>, vector<160x128xf32> -> vector<160x128xf32>
    %18 = vector.extract_strided_slice %7 {offsets = [0, 128], sizes = [160, 128], strides = [1, 1]} : vector<160x384xf32> to vector<160x128xf32>
    %19 = arith.addf %17, %18 : vector<160x128xf32>
    %cst_12 = arith.constant 0.000000e+00 : f32
    %20 = vector.broadcast %cst_12 : f32 to vector<160x128xf32>
    %21 = arith.maximumf %19, %20 : vector<160x128xf32>
    %22 = arith.truncf %21 : vector<160x128xf32> to vector<160x128xbf16>
    %c0_13 = arith.constant 0 : index
    %c0_14 = arith.constant 0 : index
    %23 = vector.load %arg6[%c0_13, %c0_14] : memref<128x128xbf16, #tpu.memory_space<vmem>>, vector<128x128xbf16>
    %cst_15 = arith.constant dense<0.000000e+00> : vector<160x128xf32>
    %24 = tpu.matmul %22, %23, %cst_15 {dimension_numbers = #tpu.dot_dimension_numbers<[1], [0], [0], [1], [0, 0, 1, 1], [], []>} : vector<160x128xbf16>, vector<128x128xbf16>, vector<160x128xf32> -> vector<160x128xf32>
    %25 = vector.extract_strided_slice %7 {offsets = [0, 256], sizes = [160, 128], strides = [1, 1]} : vector<160x384xf32> to vector<160x128xf32>
    %26 = arith.addf %24, %25 : vector<160x128xf32>
    %cst_16 = arith.constant 0.000000e+00 : f32
    %27 = vector.broadcast %cst_16 : f32 to vector<160x128xf32>
    %28 = arith.maximumf %26, %27 : vector<160x128xf32>
    %29 = arith.truncf %28 : vector<160x128xf32> to vector<160x128xbf16>
    %c0_17 = arith.constant 0 : index
    %c0_18 = arith.constant 0 : index
    %30 = vector.load %arg7[%c0_17, %c0_18] : memref<128x128xbf16, #tpu.memory_space<vmem>>, vector<128x128xbf16>
    %cst_19 = arith.constant dense<0.000000e+00> : vector<160x128xf32>
    %31 = tpu.matmul %29, %30, %cst_19 {dimension_numbers = #tpu.dot_dimension_numbers<[1], [0], [0], [1], [0, 0, 1, 1], [], []>} : vector<160x128xbf16>, vector<128x128xbf16>, vector<160x128xf32> -> vector<160x128xf32>
    %c0_20 = arith.constant 0 : index
    %c0_21 = arith.constant 0 : index
    %32 = vector.load %arg8[%c0_20, %c0_21] : memref<1x128xf32, #tpu.memory_space<vmem>>, vector<1x128xf32>
    %33 = vector.broadcast %32 : vector<1x128xf32> to vector<160x128xf32>
    %34 = arith.addf %31, %33 : vector<160x128xf32>
    %c0_22 = arith.constant 0 : index
    %c0_23 = arith.constant 0 : index
    %35 = vector.load %arg9[%c0_22, %c0_23] : memref<160x128xf32, #tpu.memory_space<vmem>>, vector<160x128xf32>
    tpu.vector_store %arg9[%c0_22, %c0_23], %34 {strides = array<i32>} : memref<160x128xf32, #tpu.memory_space<vmem>>, vector<160x128xf32>,
    return
  }
  func.func @transform_0(%arg0: i32) -> (i32, i32) {
    %c0_i32 = arith.constant 0 : i32
    %c0_i32_0 = arith.constant 0 : i32
    return %arg0, %c0_i32 : i32, i32
  }
  func.func @transform_1(%arg0: i32) -> (i32, i32) {
    %c0_i32 = arith.constant 0 : i32
    %c0_i32_0 = arith.constant 0 : i32
    return %arg0, %c0_i32 : i32, i32
  }
  func.func @transform_2(%arg0: i32) -> (i32, i32) {
    %c0_i32 = arith.constant 0 : i32
    %c0_i32_0 = arith.constant 0 : i32
    %c0_i32_1 = arith.constant 0 : i32
    return %c0_i32, %c0_i32_0 : i32, i32
  }
  func.func @transform_3(%arg0: i32) -> (i32, i32) {
    %c0_i32 = arith.constant 0 : i32
    %c0_i32_0 = arith.constant 0 : i32
    %c0_i32_1 = arith.constant 0 : i32
    return %c0_i32, %c0_i32_0 : i32, i32
  }
  func.func @transform_4(%arg0: i32) -> (i32, i32) {
    %c0_i32 = arith.constant 0 : i32
    %c0_i32_0 = arith.constant 0 : i32
    %c0_i32_1 = arith.constant 0 : i32
    return %c0_i32, %c0_i32_0 : i32, i32
  }
  func.func @transform_5(%arg0: i32) -> (i32, i32) {
    %c0_i32 = arith.constant 0 : i32
    %c0_i32_0 = arith.constant 0 : i32
    %c0_i32_1 = arith.constant 0 : i32
    return %c0_i32, %c0_i32_0 : i32, i32
  }
  func.func @transform_6(%arg0: i32) -> (i32, i32) {
    %c0_i32 = arith.constant 0 : i32
    %c0_i32_0 = arith.constant 0 : i32
    %c0_i32_1 = arith.constant 0 : i32
    return %c0_i32, %c0_i32_0 : i32, i32
  }
  func.func @transform_7(%arg0: i32) -> (i32, i32) {
    %c0_i32 = arith.constant 0 : i32
    %c0_i32_0 = arith.constant 0 : i32
    %c0_i32_1 = arith.constant 0 : i32
    return %c0_i32, %c0_i32_0 : i32, i32
  }
  func.func @transform_8(%arg0: i32) -> (i32, i32) {
    %c0_i32 = arith.constant 0 : i32
    %c0_i32_0 = arith.constant 0 : i32
    return %arg0, %c0_i32 : i32, i32
  }
}

</mosaic_0001>

<bundles_post_ra>
// kernel: tpu_custom_call.1
= control target key start
LH: loop header
LB: loop body
LE: loop exit
PB: predicated region body
PF: predicated region fallthrough
CT: control target
= control target key end

     0   :  { %s3290_s0 = inlined_call_operand.vmem [shape: bf16[320,128], index: 0, kind: input, shape index: {}]   ;;  %s3291_s1 = inlined_call_operand.vmem [shape: s32[320,1], index: 1, kind: input, shape index: {}]   ;;  %s3292_s2 = inlined_call_operand.hbm [shape: f32[16,384], index: 2, kind: input, shape index: {}]   ;;  %s3293_s3 = inlined_call_operand.vmem [shape: bf16[128,128], index: 3, kind: input, shape index: {}]   ;;  %s3294_s4 = inlined_call_operand.vmem [shape: bf16[128,128], index: 4, kind: input, shape index: {}]   ;;  %s3295_s5 = inlined_call_operand.hbm [shape: bf16[128,128], index: 5, kind: input, shape index: {}]   ;;  %s3296_s6 = inlined_call_operand.hbm [shape: bf16[128,128], index: 6, kind: input, shape index: {}]   ;;  %s3297_s7 = inlined_call_operand.vmem [shape: f32[1,128], index: 7, kind: input, shape index: {}]   ;;  %s3298_s8 = inlined_call_operand.hbm [shape: f32[320,128], index: 8, kind: output, shape index: {}]  }
   0x1   :  { %3307 = sst [smem:[#allocation29_spill]] %s3295_s5 }
   0x2   :  { %13 = vsyncpa [#allocation3], 0 }
   0x3   :  { %14 = vsyncpa [#allocation6], 0 }
   0x4   :  { %15 = vsyncpa [#allocation4], 0 }
   0x5   :  { %17 = vsyncpa [#allocation4 + $0x1], 0  ;;  %s2694_s27 = smov 0   ;;  %s2696_s28 = smov 0  }
   0x6   :  { %s2698_s29 = smov 0   ;;  %s2700_s30 = smov 0  }
   0x7 LB: > { %3308 = sst [smem:[#allocation12_spill]] %s2631_s29  ;;  %s2715_s9 = sadd.s32 4294967295, %s2635_s30   ;;  %s2635_s30 = sphi %s2700_s30, %s3354_s30   ;;  %s2631_s29 = sphi %s2698_s29, %s3356_s29   ;;  %s2627_s28 = sphi %s2696_s28, %s3358_s28   ;;  %s2623_s27 = sphi %s2694_s27, %s3357_s27  }
   0x8   : > { %s1957_s10 = sadd.s32 4294967294, %s2635_s30   ;;  %s2719_s11 = sadd.s32 1, %s2635_s30  }
   0x9   : > { %3309 = sst [smem:[#allocation13_spill]] %s2719_s11  ;;  %s208_s12 = sadd.s32 1, %s2631_s29 }
   0xa   : > { %s205_s13 = ssub.s32 %s2635_s30, %s2719_s11  ;;  %p218_p0 = scmp.ne.s32.totalorder %s2631_s29, %s2627_s28 }
   0xb   : > { %p206_p1 = scmp.eq.s32.totalorder %s205_s13, 0  ;;  %p219_p2 = scmp.eq.s32.totalorder %s2715_s9, 1 }
   0xc   : > { %p224_p3 = scmp.ne.s32.totalorder %s2627_s28, %s2623_s27  ;;  %p225_p4 = scmp.eq.s32.totalorder %s1957_s10, 1 }
   0xd   : > { %s2730_s14 = scalar_select %p206_p1, %s2631_s29, %s208_s12  }
   0xe   : > { %p2732_p5 = por %p219_p2, %p218_p0  ;;  %p2736_p6 = por %p225_p4, %p224_p3 }
   0xf   : > { %3310 = sst [smem:[#allocation14_spill]] %s2730_s14  ;;  %p1958_p7 = scmp.ge.s32.totalorder %s2635_s30, 1 }
  0x10   : > { %s3311_s15 = scalar_select %p2732_p5, 1, 0 }
  0x11   : > { %s3312_s16 = scalar_select %p2736_p6, 1, 0 }
  0x12   : > { %p232_p8 = scmp.lt.s32.totalorder %s2635_s30, 3  ;;  %p3299_p9 = scmp.eq.s32.totalorder %s2715_s9, 0 }
  0x13   : > { %s2637_s18 = smov [#allocation5]   ;;  %s2638_s21 = smov [#allocation2]  }
  0x14   : > { %p2743_p10 = pnand %p1958_p7, %p232_p8  ;;  %s263_s19 = sshll.u32 %s2637_s18, 4  ;;  %s264_s19 = int_to_ptr.vmem [resolvable:$true] %s263_s19 }
  0x15   : > { %s244_s22 = sshll.u32 %s2638_s21, 4  ;;  %s3315_s5 = sld [smem:[#allocation29_spill]]  ;;  %s2755_s22 = int_to_ptr.vmem [resolvable:$true] %s244_s22 }
  0x16   : > { %s3313_s17 = scalar_select %p2743_p10, 1, 0 }
  0x17   : > { %p2373_p11 = pneg %p2743_p10 }
  0x19   : > { %p2751_p12 = pnand %p3299_p9, %p2373_p11 }
  0x1b   : > { %s2481_s25 = scalar_lea.hbm %s3315_s5, 1024  ;;  %p2765_p0 = pneg %p2751_p12 }
  0x1c   : > { %p2482_p13 = scmp.ne.s32.totalorder %s3315_s5, %s2481_s25  ;;  %p2488_p3 = scmp.lt.u32.totalorder %s2481_s25, %s3315_s5 }
  0x1e   : > { %p2484_p1 = pnand %p2765_p0, %p2482_p13 }
  0x20   : > { %p2485_p2 = pneg %p2484_p1 }
  0x22   : > { %p2490_p4 = pnand %p2488_p3, %p2485_p2 }
  0x24   : > { %2493 = shalt.err (!%p2490_p4)
}
  0x25   : > { %s2494_s21 = scalar_lea.vmem %s264_s19, 1024  ;;  %p2502_p9 = scmp.lt.s32.totalorder %s264_s19, %s264_s19 }
  0x26   : > { %p2495_p7 = scmp.ne.s32.totalorder %s264_s19, %s2494_s21  ;;  %p2503_p6 = scmp.lt.s32.totalorder %s2494_s21, %s2494_s21 }
  0x28   : > { %p2497_p8 = pnand %p2495_p7, %p2765_p0  ;;  %p2504_p5 = por %p2503_p6, %p2502_p9 }
  0x2a   : > { %p2498_p11 = pneg %p2497_p8 }
  0x2c   : > { %p2505_p10 = pnand %p2504_p5, %p2498_p11 }
  0x2e   : > { %2508 = shalt.err (!%p2505_p10)
}
  0x2f   : > { %s3305_s23 = smov 64   ;;  %s3306_s24 = smov 4  }
  0x30   : > { %2379 = dma.hbm_to_vmem [thread:$0]  (!%p2751_p12), %s3315_s5, 1024, %s264_s19, [#allocation6], %s3305_s23, %s3305_s23, %s3306_s24  }
  0x31   : > { %s2509_s18 = scalar_lea.hbm %s3292_s2, 768 }
  0x32   : > { %p2510_p5 = scmp.ne.s32.totalorder %s3292_s2, %s2509_s18  ;;  %p2516_p10 = scmp.lt.u32.totalorder %s2509_s18, %s3292_s2 }
  0x34   : > { %p2512_p6 = pnand %p2510_p5, %p2765_p0 }
  0x36   : > { %p2513_p9 = pneg %p2512_p6 }
  0x38   : > { %p2518_p13 = pnand %p2516_p10, %p2513_p9 }
  0x3a   : > { %2521 = shalt.err (!%p2518_p13)
}
  0x3b   : > { %s2522_s19 = scalar_lea.vmem %s2755_s22, 768  ;;  %p2530_p4 = scmp.lt.s32.totalorder %s2755_s22, %s2755_s22 }
  0x3c   : > { %p2523_p1 = scmp.ne.s32.totalorder %s2755_s22, %s2522_s19  ;;  %p2531_p7 = scmp.lt.s32.totalorder %s2522_s19, %s2522_s19 }
  0x3e   : > { %p2525_p2 = pnand %p2523_p1, %p2765_p0  ;;  %p2532_p8 = por %p2531_p7, %p2530_p4 }
  0x40   : > { %p2526_p3 = pneg %p2525_p2 }
  0x42   : > { %p2533_p11 = pnand %p2532_p8, %p2526_p3 }
  0x44   : > { %2536 = shalt.err (!%p2533_p11)
}
  0x45   : > { %s2641_s14 = smov 384   ;;  %s2642_s29 = smov 24  }
  0x46   : > { %2376 = dma.hbm_to_vmem [thread:$0]  (!%p2751_p12), %s3292_s2, 768, %s2755_s22, [#allocation3], %s2641_s14, %s2641_s14, %s2642_s29  }
  0x47   : > { %s2643_s26 = smov [#allocation7]   ;;  %s2537_s21 = scalar_lea.hbm %s3296_s6, 1024 }
  0x48   : > { %s276_s10 = sshll.u32 %s2643_s26, 4  ;;  %p2538_p5 = scmp.ne.s32.totalorder %s3296_s6, %s2537_s21  ;;  %s277_s10 = int_to_ptr.vmem [resolvable:$true] %s276_s10 }
  0x49   : > { %p2544_p10 = scmp.lt.u32.totalorder %s2537_s21, %s3296_s6 }
  0x4a   : > { %p2540_p6 = pnand %p2538_p5, %p2765_p0 }
  0x4c   : > { %p2541_p9 = pneg %p2540_p6 }
  0x4e   : > { %p2546_p13 = pnand %p2544_p10, %p2541_p9 }
  0x50   : > { %2549 = shalt.err (!%p2546_p13)
}
  0x51   : > { %s2550_s22 = scalar_lea.vmem %s277_s10, 1024  ;;  %p2558_p4 = scmp.lt.s32.totalorder %s277_s10, %s277_s10 }
  0x52   : > { %p2551_p1 = scmp.ne.s32.totalorder %s277_s10, %s2550_s22  ;;  %p2559_p7 = scmp.lt.s32.totalorder %s2550_s22, %s2550_s22 }
  0x54   : > { %p2553_p2 = pnand %p2551_p1, %p2765_p0  ;;  %p2560_p8 = por %p2559_p7, %p2558_p4 }
  0x56   : > { %p2554_p3 = pneg %p2553_p2 }
  0x58   : > { %p2561_p11 = pnand %p2560_p8, %p2554_p3 }
  0x5a   : > { %2564 = shalt.err (!%p2561_p11)
}
  0x5b   : > { %s3317_s23 = smov 4   ;;  %s3318_s14 = smov 64  }
  0x5c   : > { %2382 = dma.hbm_to_vmem [thread:$0]  (!%p2751_p12), %s3296_s6, 1024, %s277_s10, [#allocation6], %s3318_s14, %s3318_s14, %s3317_s23  }
  0x5d   : > { %p3319_p5 = scmp.ne.s32.totalorder %s3313_s17, 0 }
  0x5f   : > { %313 = sbr.rel (%p3319_p5) target bundleno = 1236 (0x4d4), region = 52 }
  0x66   : > { %p3320_p0 = scmp.eq.s32.totalorder %s2715_s9, 0 }
  0x68   : > { %2610 = dma.done.wait (%p3320_p0), [#allocation3], 768   ;;  %p3321_p6 = pmov %p3320_p0 }
  0x69   : > { %p3322_p9 = pmov %p3320_p0 }
  0x6a   : > { %2612 = vsyncadd (%p3321_p6), [#allocation3], 4294966528 }
  0x6b   : > { %2614 = dma.done.wait (%p3322_p9), [#allocation6], 2048   ;;  %p3323_p10 = pmov %p3320_p0 }
  0x6c   : > { %s360_s20 = smul.u32 20, %s2715_s9  ;;  %v2644_v0 = vmov 0   ;;  %v2645_v1 = vmov 0.0   ;;  %v517_v2 = vld [vmem:[#allocation2 + $0x8] sm:$0xff]  ;;  %v520_v3 = vld [vmem:[#allocation2 + $0x20] sm:$0xff]  ;;  %v519_v12 = vld [vmem:[#allocation2 + $0x18] sm:$0xff]  ;;  %v394_v31 = vlaneseq }
  0x6d   : > { %2616 = vsyncadd (%p3323_p10), [#allocation6], 4294965248  ;;  %2438 = vset.pattern.permute.xlu1 %v2644_v0  ;;  %2437 = vset.pattern.permute.xlu0 %v2644_v0  ;;  %v2348_v6 = vpack.c.bf16 %v520_v3, %v517_v2  ;;  %v516_v9 = vld [vmem:[#allocation2] sm:$0xff]  ;;  %v518_v14 = vld [vmem:[#allocation2 + $0x10] sm:$0xff]  ;;  %vm522_vm0 = vcmask 130048   ;;  %s357_s10 = sand.u32 1, %s2627_s28  }
  0x6e   : > { %p361_p12 = scmp.lt.s32.totalorder %s360_s20, 39  ;;  %737 = vmatprep.mubr.f32.mxu1 %v2645_v1  ;;  %647 = vmatprep.mubr.f32.mxu0 %v2645_v1  ;;  %v2350_v13 = vpack.c.bf16 %v519_v12, %v516_v9  ;;  %v521_v15 = vld [vmem:[#allocation2 + $0x28] sm:$0xff]  ;;  %v2875_v32 = vand.u32 127, %v394_v31  ;;  %v2439_v35 = vld [vmem:[%s3293_s3] sm:$0xff]   ;;  %v2441_v58 = vld [vmem:[%s3293_s3 + $0x10] sm:$0xff]   ;;  %s2358_s18 = smul.u32 160, %s357_s10 }
  0x6f   : > { %2356 = vmatprep.subr.bf16.mxu1 %v2348_v6  ;;  %2349 = vmatprep.subr.bf16.mxu0 %v2348_v6  ;;  %v2352_v18 = vpack.c.bf16 %v521_v15, %v518_v14  ;;  %v2440_v54 = vld [vmem:[%s3293_s3 + $0x8] sm:$0xff]   ;;  %v2442_v62 = vld [vmem:[%s3293_s3 + $0x18] sm:$0xff]   ;;  %v2461_v31 = vld [vmem:[%s3294_s4 + $0x20] sm:$0xff]   ;;  %s2075_s23 = smul.u32 2560, %s2715_s9  ;;  %s3249_s9 = scalar_lea.sflag [#allocation4], %s357_s10 }
  0x70   : > { %s3360_s20 = smov (!%p361_p12, %s360_s20), 39  ;;  %2357 = vmatpush1.bf16.msra.mxu1 %v2350_v13  ;;  %2351 = vmatpush1.bf16.msra.mxu0 %v2350_v13  ;;  %v2445_v13 = vld [vmem:[%s3293_s3 + $0x30] sm:$0xff]   ;;  %s3198_s22 = scalar_lea.vmem [#allocation8], %s2358_s18 }
  0x71   : > { %s1968_s17 = sshll.u32 %s3360_s20, 3  ;;  %2353 = vmatprep.subr.bf16.mxu1 %v2352_v18  ;;  %s1967_s25 = sshll.u32 %s3360_s20, 2 }
  0x72   : > { %s2847_s11 = scalar_lea.vmem %s3291_s1, %s1968_s17  ;;  %s2873_s13 = scalar_lea.vmem %s3290_s0, %s1967_s25 }
  0x73   : > { %v391_v4 = vld [vmem:[%s2847_s11 + $0x88] sm:$0xff]  ;;  %v389_v5 = vld [vmem:[%s2847_s11 + $0x78] sm:$0xff]  ;;  %v392_v7 = vld [vmem:[%s2847_s11 + $0x90] sm:$0xff]  ;;  %s1852_s14 = sshll.u32 %s3198_s22, 4  ;;  %s3239_s24 = scalar_lea.hbm %s3298_s8, %s2075_s23  ;;  %s3241_s14 = int_to_ptr.vmem [resolvable:$true] %s1852_s14 }
  0x74   : > { %448 = vperm.xlu1 %2438, %v391_v4   ;;  %442 = vperm.xlu0 %2437, %v389_v5   ;;  %v390_v8 = vld [vmem:[%s2847_s11 + $0x80] sm:$0xff]  ;;  %v393_v10 = vld [vmem:[%s2847_s11 + $0x98] sm:$0xff]  ;;  %v375_v16 = vld [vmem:[%s2847_s11 + $0x8] sm:$0xff]  ;;  %s2565_s20 = scalar_lea.vmem %s3241_s14, 2560  ;;  %p3352_p1 = scmp.ne.s32.totalorder %s3311_s15, 0 }
  0x75   : > { %v374_v11 = vld [vmem:[%s2847_s11] sm:$0xff]  ;;  %v376_v17 = vld [vmem:[%s2847_s11 + $0x10] sm:$0xff]  ;;  %v377_v19 = vld [vmem:[%s2847_s11 + $0x18] sm:$0xff]  ;;  %p2566_p13 = scmp.ne.s32.totalorder %s3241_s14, %s2565_s20  ;;  %s2646_s17 = smov [#allocation8]  }
  0x76   : > { %v378_v20 = vld [vmem:[%s2847_s11 + $0x20] sm:$0xff]  ;;  %v379_v21 = vld [vmem:[%s2847_s11 + $0x28] sm:$0xff]  ;;  %v380_v22 = vld [vmem:[%s2847_s11 + $0x30] sm:$0xff]  ;;  %s2569_s12 = sshll.u32 %s2646_s17, 4  ;;  %s2570_s12 = int_to_ptr.vmem [resolvable:$false] %s2569_s12 }
  0x77   : > { %v381_v23 = vld [vmem:[%s2847_s11 + $0x38] sm:$0xff]  ;;  %v382_v24 = vld [vmem:[%s2847_s11 + $0x40] sm:$0xff]  ;;  %v383_v25 = vld [vmem:[%s2847_s11 + $0x48] sm:$0xff]  ;;  %p2567_p2 = pnand %p2566_p13, %p3352_p1  ;;  %s2571_s29 = scalar_lea.vmem %s2570_s12, 5120 }
  0x78   : > { %451 = vperm.xlu1 %2438, %v392_v7   ;;  %445 = vperm.xlu0 %2437, %v390_v8   ;;  %v384_v26 = vld [vmem:[%s2847_s11 + $0x50] sm:$0xff]  ;;  %v385_v27 = vld [vmem:[%s2847_s11 + $0x58] sm:$0xff]  ;;  %v386_v28 = vld [vmem:[%s2847_s11 + $0x60] sm:$0xff]  ;;  %p2572_p4 = scmp.lt.s32.totalorder %s3241_s14, %s2570_s12  ;;  %p2573_p7 = scmp.lt.s32.totalorder %s2571_s29, %s2565_s20 }
  0x79   : > { %v387_v29 = vld [vmem:[%s2847_s11 + $0x68] sm:$0xff]  ;;  %v388_v30 = vld [vmem:[%s2847_s11 + $0x70] sm:$0xff]  ;;  %v2443_v4 = vld [vmem:[%s3293_s3 + $0x20] sm:$0xff]   ;;  %p2568_p3 = pneg %p2567_p2 }
  0x7a   : > { %v2444_v8 = vld [vmem:[%s3293_s3 + $0x28] sm:$0xff]   ;;  %p2574_p8 = por %p2573_p7, %p2572_p4 }
  0x7c   : > { %454 = vperm.xlu0 %2437, %v393_v10   ;;  %397 = vperm.xlu1 %2438, %v374_v11   ;;  %p2575_p11 = pnand %p2574_p8, %p2568_p3 }
  0x80   : > { %400 = vperm.xlu0 %2437, %v375_v16   ;;  %403 = vperm.xlu1 %2438, %v376_v17   ;;  %v2446_v16 = vld [vmem:[%s3293_s3 + $0x38] sm:$0xff]  }
  0x84   : > { %406 = vperm.xlu0 %2437, %v377_v19   ;;  %409 = vperm.xlu1 %2438, %v378_v20   ;;  %v2448_v19 = vld [vmem:[%s2873_s13 + $0x8] sm:$0xff]   ;;  %v2449_v20 = vld [vmem:[%s2873_s13 + $0x10] sm:$0xff]  }
  0x88   : > { %412 = vperm.xlu0 %2437, %v379_v21   ;;  %415 = vperm.xlu1 %2438, %v380_v22   ;;  %v2450_v21 = vld [vmem:[%s2873_s13 + $0x18] sm:$0xff]   ;;  %v2451_v22 = vld [vmem:[%s2873_s13 + $0x20] sm:$0xff]  }
  0x8c   : > { %418 = vperm.xlu0 %2437, %v381_v23   ;;  %421 = vperm.xlu1 %2438, %v382_v24   ;;  %v2452_v23 = vld [vmem:[%s2873_s13 + $0x28] sm:$0xff]   ;;  %v2453_v24 = vld [vmem:[%s2873_s13 + $0x30] sm:$0xff]  }
  0x90   : > { %424 = vperm.xlu0 %2437, %v383_v25   ;;  %427 = vperm.xlu1 %2438, %v384_v26   ;;  %v2454_v25 = vld [vmem:[%s2873_s13 + $0x38] sm:$0xff]   ;;  %v2455_v26 = vld [vmem:[%s2873_s13 + $0x40] sm:$0xff]  }
  0x94   : > { %430 = vperm.xlu0 %2437, %v385_v27   ;;  %433 = vperm.xlu1 %2438, %v386_v28   ;;  %v2456_v27 = vld [vmem:[%s2873_s13 + $0x48] sm:$0xff]  }
  0x95   : > { %v2458_v28 = vld [vmem:[%s3294_s4 + $0x8] sm:$0xff]  }
  0x98   : > { %436 = vperm.xlu0 %2437, %v387_v29   ;;  %439 = vperm.xlu1 %2438, %v388_v30   ;;  %v2459_v29 = vld [vmem:[%s3294_s4 + $0x10] sm:$0xff]   ;;  %v2460_v30 = vld [vmem:[%s3294_s4 + $0x18] sm:$0xff]  }
  0xf3   : > { %v449_v33 = vpop.permute.xlu1 %448  ;;  %v443_v34 = vpop.permute.xlu0 %442 }
  0xf4   : > { %vm471_vm1 = vcmp.eq.s32.totalorder %v2875_v32, %v443_v34  ;;  %vm473_vm2 = vcmp.eq.s32.totalorder %v2875_v32, %v449_v33  ;;  %v2463_v33 = vld [vmem:[%s3294_s4 + $0x30] sm:$0xff]   ;;  %v2464_v34 = vld [vmem:[%s3294_s4 + $0x38] sm:$0xff]  }
  0xf5   : > { %v2882_v36 = vsel %vm471_vm1, 1.0, %v2645_v1  ;;  %v2895_v40 = vsel %vm473_vm2, 1.0, %v2645_v1 }
  0xf6   : > { %2004 = vmatmul.mubr.msk.f32.vlgmr.msra.gmra.mrb[0].mxu1 %vm522_vm0, %v2882_v36 }
  0xf7   : > { %2355 = vmatpush3.bf16.msra.mxu1 %v2352_v18  ;;  %v452_v37 = vpop.permute.xlu1 %451  ;;  %v446_v38 = vpop.permute.xlu0 %445  ;;  %743 = vmatprep.mubr.f32.mxu1 %v2645_v1  ;;  %v2447_v18 = vld [vmem:[%s2873_s13] sm:$0xff]  }
  0xf8   : > { %vm472_vm3 = vcmp.eq.s32.totalorder %v2875_v32, %v446_v38  ;;  %2204 = vmatprep.subr.bf16.mxu1 %v2439_v35  ;;  %vm474_vm5 = vcmp.eq.s32.totalorder %v2875_v32, %v452_v37  ;;  %v2467_v37 = vld [vmem:[#allocation5 + $0x10] sm:$0xff]   ;;  %v2468_v38 = vld [vmem:[#allocation5 + $0x18] sm:$0xff]  }
  0xf9   : > { %v2890_v39 = vsel %vm472_vm3, 1.0, %v2645_v1  ;;  %v2908_v46 = vsel %vm474_vm5, 1.0, %v2645_v1 }
  0xfa   : > { %2005 = vmatmul.mubr.msk.f32.gmra.mrb[2].mxu1 %vm522_vm0, %v2890_v39 }
  0xfb   : > { %v455_v41 = vpop.permute.xlu0 %454  ;;  %v398_v42 = vpop.permute.xlu1 %397  ;;  %749 = vmatprep.mubr.f32.mxu1 %v2645_v1 }
  0xfc   : > { %vm456_vm4 = vcmp.eq.s32.totalorder %v2875_v32, %v398_v42  ;;  %vm475_vm7 = vcmp.eq.s32.totalorder %v2875_v32, %v455_v41 }
  0xfd   : > { %v1969_v43 = vsel %vm456_vm4, 1.0, %v2645_v1  ;;  %v2919_v50 = vsel %vm475_vm7, 1.0, %v2645_v1 }
  0xfe   : > { %1989 = vmatmul.mubr.msk.f32.vlgmr.msra.gmra.mrb[0].mxu0 %vm522_vm0, %v1969_v43  ;;  %2006 = vmatmul.mubr.msk.f32.gmra.mrb[4].mxu1 %vm522_vm0, %v2895_v40 }
  0xff   : > { %v401_v44 = vpop.permute.xlu0 %400  ;;  %v404_v45 = vpop.permute.xlu1 %403  ;;  %653 = vmatprep.mubr.f32.mxu0 %v2645_v1  ;;  %755 = vmatprep.mubr.f32.mxu1 %v2645_v1 }
 0x100   : > { %vm457_vm6 = vcmp.eq.s32.totalorder %v2875_v32, %v401_v44  ;;  %vm458_vm8 = vcmp.eq.s32.totalorder %v2875_v32, %v404_v45 }
 0x101   : > { %v1970_v47 = vsel %vm457_vm6, 1.0, %v2645_v1  ;;  %v1971_v51 = vsel %vm458_vm8, 1.0, %v2645_v1 }
 0x102   : > { %1990 = vmatmul.mubr.msk.f32.gmra.mrb[2].mxu0 %vm522_vm0, %v1970_v47  ;;  %2007 = vmatmul.mubr.msk.f32.gmra.mrb[6].mxu1 %vm522_vm0, %v2908_v46 }
 0x103   : > { %v407_v48 = vpop.permute.xlu0 %406  ;;  %v410_v49 = vpop.permute.xlu1 %409  ;;  %659 = vmatprep.mubr.f32.mxu0 %v2645_v1  ;;  %761 = vmatprep.mubr.f32.mxu1 %v2645_v1 }
 0x104   : > { %vm459_vm9 = vcmp.eq.s32.totalorder %v2875_v32, %v407_v48  ;;  %vm460_vm10 = vcmp.eq.s32.totalorder %v2875_v32, %v410_v49 }
 0x105   : > { %v1972_v55 = vsel %vm459_vm9, 1.0, %v2645_v1  ;;  %v1973_v59 = vsel %vm460_vm10, 1.0, %v2645_v1 }
 0x106   : > { %1991 = vmatmul.mubr.msk.f32.gmra.mrb[4].mxu0 %vm522_vm0, %v1971_v51  ;;  %2008 = vmatmul.mubr.msk.f32.gmra.mrb[8].mxu1 %vm522_vm0, %v2919_v50 }
 0x107   : > { %v413_v52 = vpop.permute.xlu0 %412  ;;  %2174 = vmatprep.mubr.msk.f32.mxu1 %vm522_vm0, %v1969_v43  ;;  %v416_v53 = vpop.permute.xlu1 %415  ;;  %665 = vmatprep.mubr.f32.mxu0 %v2645_v1 }
 0x108   : > { %vm461_vm11 = vcmp.eq.s32.totalorder %v2875_v32, %v413_v52  ;;  %vm462_vm12 = vcmp.eq.s32.totalorder %v2875_v32, %v416_v53 }
 0x109   : > { %v1974_v63 = vsel %vm461_vm11, 1.0, %v2645_v1  ;;  %v1975_v0 = vsel %vm462_vm12, 1.0, %v2645_v1 }
 0x10a   : > { %1992 = vmatmul.mubr.msk.f32.gmra.mrb[6].mxu0 %vm522_vm0, %v1972_v55  ;;  %2175 = vmatmul.mubr.msk.f32.vlgmr.msra.gmra.mrb[10].mxu1 %vm522_vm0, %v1970_v47 }
 0x10b   : > { %2205 = vmatpush3.bf16.msra.mxu1 %v2439_v35  ;;  %v419_v56 = vpop.permute.xlu0 %418  ;;  %2177 = vmatprep.mubr.msk.f32.mxu1 %vm522_vm0, %v1971_v51  ;;  %v422_v57 = vpop.permute.xlu1 %421  ;;  %v2465_v35 = vld [vmem:[#allocation5] sm:$0xff]  }
 0x10c   : > { %671 = vmatprep.mubr.f32.mxu0 %v2645_v1  ;;  %2206 = vmatprep.subr.bf16.mxu1 %v2440_v54  ;;  %vm463_vm13 = vcmp.eq.s32.totalorder %v2875_v32, %v419_v56  ;;  %vm464_vm14 = vcmp.eq.s32.totalorder %v2875_v32, %v422_v57 }
 0x10d   : > { %v1976_v2 = vsel %vm463_vm13, 1.0, %v2645_v1  ;;  %v1977_v5 = vsel %vm464_vm14, 1.0, %v2645_v1 }
 0x10e   : > { %1993 = vmatmul.mubr.msk.f32.gmra.mrb[8].mxu0 %vm522_vm0, %v1973_v59  ;;  %2178 = vmatmul.mubr.msk.f32.gmra.mrb[12].mxu1 %vm522_vm0, %v1972_v55 }
 0x10f   : > { %v425_v60 = vpop.permute.xlu0 %424  ;;  %2180 = vmatprep.mubr.msk.f32.mxu1 %vm522_vm0, %v1973_v59  ;;  %2207 = vmatpush3.bf16.msra.mxu1 %v2440_v54  ;;  %v428_v61 = vpop.permute.xlu1 %427 }
 0x110   : > { %677 = vmatprep.mubr.f32.mxu0 %v2645_v1  ;;  %2208 = vmatprep.subr.bf16.mxu1 %v2441_v58  ;;  %vm465_vm15 = vcmp.eq.s32.totalorder %v2875_v32, %v425_v60  ;;  %vm466_vm1 = vcmp.eq.s32.totalorder %v2875_v32, %v428_v61 }
 0x111   : > { %v1978_v7 = vsel %vm465_vm15, 1.0, %v2645_v1  ;;  %v1979_v9 = vsel %vm466_vm1, 1.0, %v2645_v1 }
 0x112   : > { %1994 = vmatmul.mubr.msk.f32.gmra.mrb[10].mxu0 %vm522_vm0, %v1974_v63  ;;  %2181 = vmatmul.mubr.msk.f32.gmra.mrb[14].mxu1 %vm522_vm0, %v1974_v63 }
 0x113   : > { %2183 = vmatprep.mubr.msk.f32.mxu1 %vm522_vm0, %v1975_v0  ;;  %2209 = vmatpush3.bf16.msra.mxu1 %v2441_v58  ;;  %v431_v3 = vpop.permute.xlu0 %430  ;;  %v434_v6 = vpop.permute.xlu1 %433 }
 0x114   : > { %683 = vmatprep.mubr.f32.mxu0 %v2645_v1  ;;  %2210 = vmatprep.subr.bf16.mxu1 %v2442_v62  ;;  %vm467_vm2 = vcmp.eq.s32.totalorder %v2875_v32, %v431_v3  ;;  %vm468_vm3 = vcmp.eq.s32.totalorder %v2875_v32, %v434_v6 }
 0x115   : > { %v1980_v12 = vsel %vm467_vm2, 1.0, %v2645_v1  ;;  %v1981_v14 = vsel %vm468_vm3, 1.0, %v2645_v1 }
 0x116   : > { %1995 = vmatmul.mubr.msk.f32.gmra.mrb[12].mxu0 %vm522_vm0, %v1975_v0  ;;  %2184 = vmatmul.mubr.msk.f32.gmra.mrb[16].mxu1 %vm522_vm0, %v1976_v2 }
 0x117   : > { %2186 = vmatprep.mubr.msk.f32.mxu1 %vm522_vm0, %v1977_v5  ;;  %689 = vmatprep.mubr.f32.mxu0 %v2645_v1  ;;  %v437_v10 = vpop.permute.xlu0 %436  ;;  %v440_v11 = vpop.permute.xlu1 %439 }
 0x118   : > { %2211 = vmatpush3.bf16.msra.mxu1 %v2442_v62  ;;  %vm469_vm4 = vcmp.eq.s32.totalorder %v2875_v32, %v437_v10  ;;  %vm470_vm5 = vcmp.eq.s32.totalorder %v2875_v32, %v440_v11  ;;  %v2462_v32 = vld [vmem:[%s3294_s4 + $0x28] sm:$0xff]  }
 0x119   : > { %2212 = vmatprep.subr.bf16.mxu1 %v2443_v4  ;;  %v1982_v15 = vsel %vm469_vm4, 1.0, %v2645_v1  ;;  %v1983_v17 = vsel %vm470_vm5, 1.0, %v2645_v1 }
 0x11a   : > { %1996 = vmatmul.mubr.msk.f32.gmra.mrb[14].mxu0 %vm522_vm0, %v1976_v2  ;;  %2187 = vmatmul.mubr.msk.f32.gmra.mrb[18].mxu1 %vm522_vm0, %v1978_v7 }
 0x11b   : > { %2189 = vmatprep.mubr.msk.f32.mxu1 %vm522_vm0, %v1979_v9  ;;  %695 = vmatprep.mubr.f32.mxu0 %v2645_v1 }
 0x11c   : > { %2213 = vmatpush3.bf16.msra.mxu1 %v2443_v4 }
 0x11d   : > { %2214 = vmatprep.subr.bf16.mxu1 %v2444_v8 }
 0x11e   : > { %1997 = vmatmul.mubr.msk.f32.gmra.mrb[16].mxu0 %vm522_vm0, %v1977_v5  ;;  %2190 = vmatmul.mubr.msk.f32.gmra.mrb[20].mxu1 %vm522_vm0, %v1980_v12 }
 0x11f   : > { %2192 = vmatprep.mubr.msk.f32.mxu1 %vm522_vm0, %v1981_v14  ;;  %701 = vmatprep.mubr.f32.mxu0 %v2645_v1 }
 0x120   : > { %2215 = vmatpush3.bf16.msra.mxu1 %v2444_v8 }
 0x121   : > { %2216 = vmatprep.subr.bf16.mxu1 %v2445_v13 }
 0x122   : > { %1998 = vmatmul.mubr.msk.f32.gmra.mrb[18].mxu0 %vm522_vm0, %v1978_v7  ;;  %2193 = vmatmul.mubr.msk.f32.gmra.mrb[22].mxu1 %vm522_vm0, %v1982_v15 }
 0x123   : > { %2195 = vmatprep.mubr.msk.f32.mxu1 %vm522_vm0, %v1983_v17  ;;  %707 = vmatprep.mubr.f32.mxu0 %v2645_v1 }
 0x124   : > { %2217 = vmatpush3.bf16.msra.mxu1 %v2445_v13 }
 0x125   : > { %2218 = vmatprep.subr.bf16.mxu1 %v2446_v16 }
 0x126   : > { %1999 = vmatmul.mubr.msk.f32.gmra.mrb[20].mxu0 %vm522_vm0, %v1979_v9  ;;  %2196 = vmatmul.mubr.msk.f32.gmra.mrb[24].mxu1 %vm522_vm0, %v2882_v36  ;;  %v2466_v36 = vld [vmem:[#allocation5 + $0x8] sm:$0xff]  }
 0x127   : > { %2198 = vmatprep.mubr.msk.f32.mxu1 %vm522_vm0, %v2890_v39  ;;  %713 = vmatprep.mubr.f32.mxu0 %v2645_v1  ;;  %v2469_v39 = vld [vmem:[#allocation5 + $0x20] sm:$0xff]  }
 0x128   : > { %2219 = vmatpush3.bf16.msra.mxu1 %v2446_v16 }
 0x129   : > { %2276 = vmatprep.subr.bf16.mxu1 %v2465_v35 }
 0x12a   : > { %2000 = vmatmul.mubr.msk.f32.gmra.mrb[22].mxu0 %vm522_vm0, %v1980_v12  ;;  %2199 = vmatmul.mubr.msk.f32.gmra.mrb[26].mxu1 %vm522_vm0, %v2895_v40  ;;  %v2470_v40 = vld [vmem:[#allocation5 + $0x28] sm:$0xff]  }
 0x12b   : > { %2201 = vmatprep.mubr.msk.f32.mxu1 %vm522_vm0, %v2908_v46  ;;  %719 = vmatprep.mubr.f32.mxu0 %v2645_v1 }
 0x12e   : > { %2001 = vmatmul.mubr.msk.f32.gmra.mrb[24].mxu0 %vm522_vm0, %v1981_v14  ;;  %2202 = vmatmul.mubr.msk.f32.gmra.mrb[28].mxu1 %vm522_vm0, %v2919_v50 }
 0x12f   : > { %725 = vmatprep.mubr.f32.mxu0 %v2645_v1  ;;  %2220 = vmatprep.mubr.bf16.mxu1 %v2447_v18 }
 0x132   : > { %2002 = vmatmul.mubr.msk.f32.gmra.mrb[26].mxu0 %vm522_vm0, %v1982_v15  ;;  %2221 = vmatmul.mubr.bf16.vlgmr.msra.gmra.mrb[32].mxu1 %v2448_v19 }
 0x133   : > { %731 = vmatprep.mubr.f32.mxu0 %v2645_v1  ;;  %2224 = vmatprep.mubr.bf16.mxu1 %v2449_v20  ;;  %v2457_v1 = vld [vmem:[%s3294_s4] sm:$0xff]  }
 0x134   : > { %2240 = vmatprep.subr.bf16.mxu0 %v2457_v1  ;;  %2277 = vmatpush3.bf16.msra.mxu1 %v2465_v35 }
 0x135   : > { %2241 = vmatpush3.bf16.msra.mxu0 %v2457_v1  ;;  %2278 = vmatprep.subr.bf16.mxu1 %v2466_v36 }
 0x136   : > { %2003 = vmatmul.mubr.msk.f32.gmra.mrb[28].mxu0 %vm522_vm0, %v1983_v17  ;;  %2242 = vmatprep.subr.bf16.mxu0 %v2458_v28 }
 0x138   : > { %2279 = vmatpush3.bf16.msra.mxu1 %v2466_v36 }
 0x139   : > { %2243 = vmatpush3.bf16.msra.mxu0 %v2458_v28  ;;  %2280 = vmatprep.subr.bf16.mxu1 %v2467_v37 }
 0x13a   : > { %2225 = vmatmul.mubr.bf16.gmra.mrb[36].mxu1 %v2450_v21  ;;  %2244 = vmatprep.subr.bf16.mxu0 %v2459_v29 }
 0x13b   : > { %2228 = vmatprep.mubr.bf16.mxu1 %v2451_v22 }
 0x13c   : > { %2281 = vmatpush3.bf16.msra.mxu1 %v2467_v37 }
 0x13d   : > { %2245 = vmatpush3.bf16.msra.mxu0 %v2459_v29  ;;  %2282 = vmatprep.subr.bf16.mxu1 %v2468_v38 }
 0x13e   : > { %2246 = vmatprep.subr.bf16.mxu0 %v2460_v30 }
 0x140   : > { %2283 = vmatpush3.bf16.msra.mxu1 %v2468_v38 }
 0x141   : > { %2247 = vmatpush3.bf16.msra.mxu0 %v2460_v30  ;;  %2284 = vmatprep.subr.bf16.mxu1 %v2469_v39 }
 0x142   : > { %2229 = vmatmul.mubr.bf16.gmra.mrb[40].mxu1 %v2452_v23  ;;  %2248 = vmatprep.subr.bf16.mxu0 %v2461_v31 }
 0x143   : > { %2232 = vmatprep.mubr.bf16.mxu1 %v2453_v24 }
 0x144   : > { %2285 = vmatpush3.bf16.msra.mxu1 %v2469_v39 }
 0x145   : > { %2249 = vmatpush3.bf16.msra.mxu0 %v2461_v31  ;;  %2286 = vmatprep.subr.bf16.mxu1 %v2470_v40 }
 0x146   : > { %2250 = vmatprep.subr.bf16.mxu0 %v2462_v32 }
 0x148   : > { %2287 = vmatpush3.bf16.msra.mxu1 %v2470_v40 }
 0x149   : > { %2251 = vmatpush3.bf16.msra.mxu0 %v2462_v32 }
 0x14a   : > { %2233 = vmatmul.mubr.bf16.gmra.mrb[44].mxu1 %v2454_v25  ;;  %2252 = vmatprep.subr.bf16.mxu0 %v2463_v33 }
 0x14b   : > { %2236 = vmatprep.mubr.bf16.mxu1 %v2455_v26 }
 0x14d   : > { %2253 = vmatpush3.bf16.msra.mxu0 %v2463_v33 }
 0x14e   : > { %2254 = vmatprep.subr.bf16.mxu0 %v2464_v34 }
 0x151   : > { %2255 = vmatpush3.bf16.msra.mxu0 %v2464_v34 }
 0x152   : > { %2237 = vmatmul.mubr.bf16.gmra.mrb[48].mxu1 %v2456_v27 }
 0x1c9   : > { %v3053_v41 = vpop.f32.mrb[0].mxu1 }
 0x1ca   : > { %v3055_v42 = vpop.f32.mrb[1].mxu1 }
 0x1cd   : > { %v3057_v43 = vpop.f32.mrb[2].mxu1 }
 0x1ce   : > { %v3059_v44 = vpop.f32.mrb[3].mxu1 }
 0x1d1   : > { %v649_v45 = vpop.f32.mrb[0].mxu0  ;;  %v3061_v46 = vpop.f32.mrb[4].mxu1 }
 0x1d2   : > { %v3063_v47 = vpop.f32.mrb[1].mxu0  ;;  %v3065_v48 = vpop.f32.mrb[5].mxu1 }
 0x1d5   : > { %v655_v49 = vpop.f32.mrb[2].mxu0  ;;  %v3067_v50 = vpop.f32.mrb[6].mxu1 }
 0x1d6   : > { %v3069_v51 = vpop.f32.mrb[3].mxu0  ;;  %v3071_v52 = vpop.f32.mrb[7].mxu1 }
 0x1d9   : > { %v661_v53 = vpop.f32.mrb[4].mxu0  ;;  %v3073_v54 = vpop.f32.mrb[8].mxu1 }
 0x1da   : > { %v3075_v55 = vpop.f32.mrb[5].mxu0  ;;  %v3077_v56 = vpop.f32.mrb[9].mxu1 }
 0x1dd   : > { %v667_v57 = vpop.f32.mrb[6].mxu0  ;;  %v3079_v58 = vpop.f32.mrb[10].mxu1 }
 0x1de   : > { %v3081_v59 = vpop.f32.mrb[7].mxu0  ;;  %v3083_v60 = vpop.f32.mrb[11].mxu1 }
 0x1e1   : > { %v673_v61 = vpop.f32.mrb[8].mxu0  ;;  %v3085_v62 = vpop.f32.mrb[12].mxu1 }
 0x1e2   : > { %v3087_v63 = vpop.f32.mrb[9].mxu0  ;;  %v3089_v0 = vpop.f32.mrb[13].mxu1 }
 0x1e5   : > { %v679_v2 = vpop.f32.mrb[10].mxu0  ;;  %v3091_v3 = vpop.f32.mrb[14].mxu1 }
 0x1e6   : > { %3324 = vst [vmem:[#allocation15_spill] sm:$0xff] %v3091_v3  ;;  %v3093_v4 = vpop.f32.mrb[11].mxu0  ;;  %v3095_v5 = vpop.f32.mrb[15].mxu1 }
 0x1e9   : > { %v685_v6 = vpop.f32.mrb[12].mxu0  ;;  %v3097_v7 = vpop.f32.mrb[16].mxu1 }
 0x1ea   : > { %3325 = vst [vmem:[#allocation16_spill] sm:$0xff] %v3097_v7  ;;  %v3099_v8 = vpop.f32.mrb[13].mxu0  ;;  %v3101_v9 = vpop.f32.mrb[17].mxu1 }
 0x1ed   : > { %v691_v10 = vpop.f32.mrb[14].mxu0  ;;  %v3103_v11 = vpop.f32.mrb[18].mxu1 }
 0x1ee   : > { %3326 = vst [vmem:[#allocation17_spill] sm:$0xff] %v3103_v11  ;;  %v3105_v12 = vpop.f32.mrb[15].mxu0  ;;  %v3107_v13 = vpop.f32.mrb[19].mxu1 }
 0x1ef   : > { %3327 = vst [vmem:[#allocation18_spill] sm:$0xff] %v3107_v13 }
 0x1f1   : > { %v697_v14 = vpop.f32.mrb[16].mxu0  ;;  %v3109_v15 = vpop.f32.mrb[20].mxu1 }
 0x1f2   : > { %3328 = vst [vmem:[#allocation19_spill] sm:$0xff] %v3109_v15  ;;  %v3111_v16 = vpop.f32.mrb[17].mxu0  ;;  %v3113_v17 = vpop.f32.mrb[21].mxu1 }
 0x1f3   : > { %3329 = vst [vmem:[#allocation20_spill] sm:$0xff] %v3113_v17 }
 0x1f5   : > { %v703_v18 = vpop.f32.mrb[18].mxu0  ;;  %v3115_v19 = vpop.f32.mrb[22].mxu1 }
 0x1f6   : > { %3330 = vst [vmem:[#allocation21_spill] sm:$0xff] %v3115_v19  ;;  %v3117_v20 = vpop.f32.mrb[19].mxu0  ;;  %v3119_v21 = vpop.f32.mrb[23].mxu1 }
 0x1f7   : > { %3331 = vst [vmem:[#allocation22_spill] sm:$0xff] %v3119_v21 }
 0x1f9   : > { %v709_v22 = vpop.f32.mrb[20].mxu0  ;;  %v3121_v23 = vpop.f32.mrb[24].mxu1 }
 0x1fa   : > { %3332 = vst [vmem:[#allocation23_spill] sm:$0xff] %v3121_v23  ;;  %v3123_v24 = vpop.f32.mrb[21].mxu0  ;;  %v3125_v25 = vpop.f32.mrb[25].mxu1 }
 0x1fb   : > { %3333 = vst [vmem:[#allocation24_spill] sm:$0xff] %v3125_v25 }
 0x1fd   : > { %v715_v26 = vpop.f32.mrb[22].mxu0  ;;  %v3127_v27 = vpop.f32.mrb[26].mxu1 }
 0x1fe   : > { %3334 = vst [vmem:[#allocation25_spill] sm:$0xff] %v3127_v27  ;;  %v3129_v1 = vpop.f32.mrb[23].mxu0  ;;  %v3131_v28 = vpop.f32.mrb[27].mxu1 }
 0x1ff   : > { %3335 = vst [vmem:[#allocation26_spill] sm:$0xff] %v3131_v28 }
 0x201   : > { %v721_v29 = vpop.f32.mrb[24].mxu0  ;;  %v3133_v30 = vpop.f32.mrb[28].mxu1 }
 0x202   : > { %3336 = vst [vmem:[#allocation27_spill] sm:$0xff] %v3133_v30  ;;  %v3135_v31 = vpop.f32.mrb[25].mxu0  ;;  %v3137_v32 = vpop.f32.mrb[29].mxu1 }
 0x203   : > { %3337 = vst [vmem:[#allocation28_spill] sm:$0xff] %v3137_v32 }
 0x205   : > { %v727_v33 = vpop.f32.mrb[26].mxu0  ;;  %v2222_v34 = vpop.f32.mrb[32].mxu1 }
 0x206   : > { %v1120_v35 = vadd.f32 %v2222_v34, %v661_v53  ;;  %v3139_v36 = vpop.f32.mrb[27].mxu0  ;;  %v1111_v37 = vpop.f32.mrb[33].mxu1 }
 0x207   : > { %v1112_v38 = vadd.f32 %v1111_v37, %v649_v45  ;;  %v2223_v39 = vpop.f32.mrb[34].mxu1 }
 0x208   : > { %v1123_v40 = vadd.f32 %v2223_v39, %v667_v57  ;;  %v1114_v27 = vpop.f32.mrb[35].mxu1  ;;  %v1192_v28 = vmax.f32 %v1120_v35, 0.0 }
 0x209   : > { %v1115_v19 = vadd.f32 %v1114_v27, %v655_v49  ;;  %v733_v23 = vpop.f32.mrb[28].mxu0  ;;  %v1190_v30 = vmax.f32 %v1112_v38, 0.0 }
 0x20a   : > { %v1193_v21 = vmax.f32 %v1123_v40, 0.0  ;;  %v3141_v25 = vpop.f32.mrb[29].mxu0 }
 0x20b   : > { %v1191_v11 = vmax.f32 %v1115_v19, 0.0 }
 0x20c   : > { %v1211_v15 = vpack.c.bf16 %v1193_v21, %v1192_v28 }
 0x20d   : > { %v1210_v32 = vpack.c.bf16 %v1191_v11, %v1190_v30  ;;  %v2226_v13 = vpop.f32.mrb[36].mxu1 }
 0x20e   : > { %v1136_v17 = vadd.f32 %v2226_v13, %v685_v6  ;;  %v1127_v53 = vpop.f32.mrb[37].mxu1 }
 0x20f   : > { %v1128_v34 = vadd.f32 %v1127_v53, %v673_v61  ;;  %v2227_v3 = vpop.f32.mrb[38].mxu1  ;;  %2256 = vmatprep.mubr.bf16.mxu0 %v1210_v32 }
 0x210   : > { %v1139_v45 = vadd.f32 %v2227_v3, %v691_v10  ;;  %v1130_v37 = vpop.f32.mrb[39].mxu1  ;;  %2257 = vmatmul.mubr.bf16.vlgmr.msra.gmra.mrb[32].mxu0 %v1211_v15  ;;  %v1196_v49 = vmax.f32 %v1136_v17, 0.0 }
 0x211   : > { %v1131_v57 = vadd.f32 %v1130_v37, %v679_v2  ;;  %v1194_v35 = vmax.f32 %v1128_v34, 0.0 }
 0x212   : > { %v1197_v27 = vmax.f32 %v1139_v45, 0.0 }
 0x213   : > { %v1195_v39 = vmax.f32 %v1131_v57, 0.0 }
 0x214   : > { %v1213_v40 = vpack.c.bf16 %v1197_v27, %v1196_v49 }
 0x215   : > { %v1212_v7 = vpack.c.bf16 %v1195_v39, %v1194_v35  ;;  %v2230_v38 = vpop.f32.mrb[40].mxu1 }
 0x216   : > { %v1152_v19 = vadd.f32 %v2230_v38, %v709_v22  ;;  %v1143_v21 = vpop.f32.mrb[41].mxu1 }
 0x217   : > { %v1144_v11 = vadd.f32 %v1143_v21, %v697_v14  ;;  %v2231_v28 = vpop.f32.mrb[42].mxu1  ;;  %2260 = vmatprep.mubr.bf16.mxu0 %v1212_v7 }
 0x218   : > { %v1155_v6 = vadd.f32 %v2231_v28, %v715_v26  ;;  %v1146_v61 = vpop.f32.mrb[43].mxu1  ;;  %2261 = vmatmul.mubr.bf16.gmra.mrb[36].mxu0 %v1213_v40  ;;  %v1200_v3 = vmax.f32 %v1152_v19, 0.0 }
 0x219   : > { %v1147_v13 = vadd.f32 %v1146_v61, %v703_v18  ;;  %v1198_v15 = vmax.f32 %v1144_v11, 0.0 }
 0x21a   : > { %v1201_v10 = vmax.f32 %v1155_v6, 0.0 }
 0x21b   : > { %v1199_v2 = vmax.f32 %v1147_v13, 0.0 }
 0x21c   : > { %v1215_v17 = vpack.c.bf16 %v1201_v10, %v1200_v3  ;;  %v2473_v3 = vld [vmem:[#allocation7] sm:$0xff]   ;;  %v2476_v10 = vld [vmem:[#allocation7 + $0x18] sm:$0xff]  }
 0x21d   : > { %v1214_v30 = vpack.c.bf16 %v1199_v2, %v1198_v15  ;;  %v2234_v32 = vpop.f32.mrb[44].mxu1  ;;  %2312 = vmatprep.subr.bf16.mxu0 %v2473_v3  ;;  %v2477_v15 = vld [vmem:[#allocation7 + $0x20] sm:$0xff]   ;;  %v2478_v2 = vld [vmem:[#allocation7 + $0x28] sm:$0xff]  }
 0x21e   : > { %v1168_v53 = vadd.f32 %v2234_v32, %v733_v23  ;;  %v1159_v34 = vpop.f32.mrb[45].mxu1  ;;  %2313 = vmatpush3.bf16.msra.mxu0 %v2473_v3 }
 0x21f   : > { %v1160_v45 = vadd.f32 %v1159_v34, %v721_v29  ;;  %v2235_v37 = vpop.f32.mrb[46].mxu1  ;;  %2264 = vmatprep.mubr.bf16.mxu0 %v1214_v30 }
 0x220   : > { %v1171_v14 = vadd.f32 %v2235_v37, %v3053_v41  ;;  %v1162_v22 = vpop.f32.mrb[47].mxu1  ;;  %2265 = vmatmul.mubr.bf16.gmra.mrb[40].mxu0 %v1215_v17  ;;  %v1204_v26 = vmax.f32 %v1168_v53, 0.0 }
 0x221   : > { %v1163_v7 = vadd.f32 %v1162_v22, %v727_v33  ;;  %v1202_v18 = vmax.f32 %v1160_v45, 0.0 }
 0x222   : > { %v1205_v57 = vmax.f32 %v1171_v14, 0.0 }
 0x223   : > { %v1203_v49 = vmax.f32 %v1163_v7, 0.0 }
 0x224   : > { %v1217_v27 = vpack.c.bf16 %v1205_v57, %v1204_v26 }
 0x225   : > { %v1216_v35 = vpack.c.bf16 %v1203_v49, %v1202_v18  ;;  %v2238_v39 = vpop.f32.mrb[48].mxu1 }
 0x226   : > { %v1184_v40 = vadd.f32 %v2238_v39, %v3067_v50  ;;  %v1175_v38 = vpop.f32.mrb[49].mxu1  ;;  %v2471_v50 = vld [vmem:[#allocation5 + $0x30] sm:$0xff]  }
 0x227   : > { %v1176_v23 = vadd.f32 %v1175_v38, %v3057_v43  ;;  %v2239_v29 = vpop.f32.mrb[50].mxu1  ;;  %2268 = vmatprep.mubr.bf16.mxu0 %v1216_v35  ;;  %2288 = vmatprep.subr.bf16.mxu1 %v2471_v50  ;;  %v2472_v43 = vld [vmem:[#allocation5 + $0x38] sm:$0xff]  }
 0x228   : > { %v1187_v19 = vadd.f32 %v2239_v29, %v3073_v54  ;;  %v1178_v41 = vpop.f32.mrb[51].mxu1  ;;  %2269 = vmatmul.mubr.bf16.gmra.mrb[44].mxu0 %v1217_v27  ;;  %v1208_v21 = vmax.f32 %v1184_v40, 0.0  ;;  %2289 = vmatpush3.bf16.msra.mxu1 %v2471_v50  ;;  %v2474_v54 = vld [vmem:[#allocation7 + $0x8] sm:$0xff]  }
 0x229   : > { %v1179_v33 = vadd.f32 %v1178_v41, %v3061_v46  ;;  %v1206_v28 = vmax.f32 %v1176_v23, 0.0  ;;  %2290 = vmatprep.subr.bf16.mxu1 %v2472_v43  ;;  %2314 = vmatprep.subr.bf16.mxu0 %v2474_v54  ;;  %v2475_v46 = vld [vmem:[#allocation7 + $0x10] sm:$0xff]  }
 0x22a   : > { %v1209_v11 = vmax.f32 %v1187_v19, 0.0  ;;  %2315 = vmatpush3.bf16.msra.mxu0 %v2474_v54 }
 0x22b   : > { %v1207_v6 = vmax.f32 %v1179_v33, 0.0  ;;  %2316 = vmatprep.subr.bf16.mxu0 %v2475_v46 }
 0x22c   : > { %v1219_v61 = vpack.c.bf16 %v1209_v11, %v1208_v21  ;;  %2291 = vmatpush3.bf16.msra.mxu1 %v2472_v43 }
 0x22d   : > { %v1218_v13 = vpack.c.bf16 %v1207_v6, %v1206_v28 }
 0x22e   : > { %2317 = vmatpush3.bf16.msra.mxu0 %v2475_v46 }
 0x22f   : > { %2272 = vmatprep.mubr.bf16.mxu0 %v1218_v13  ;;  %2318 = vmatprep.subr.bf16.mxu0 %v2476_v10 }
 0x230   : > { %2273 = vmatmul.mubr.bf16.gmra.mrb[48].mxu0 %v1219_v61 }
 0x232   : > { %2319 = vmatpush3.bf16.msra.mxu0 %v2476_v10 }
 0x233   : > { %2320 = vmatprep.subr.bf16.mxu0 %v2477_v15 }
 0x236   : > { %2321 = vmatpush3.bf16.msra.mxu0 %v2477_v15 }
 0x237   : > { %2322 = vmatprep.subr.bf16.mxu0 %v2478_v2 }
 0x23a   : > { %2323 = vmatpush3.bf16.msra.mxu0 %v2478_v2 }
 0x2e3   : > { %v2258_v17 = vpop.f32.mrb[32].mxu0 }
 0x2e4   : > { %v1327_v30 = vadd.f32 %v2258_v17, %v3075_v55  ;;  %v1318_v32 = vpop.f32.mrb[33].mxu0 }
 0x2e5   : > { %v1319_v53 = vadd.f32 %v1318_v32, %v3063_v47  ;;  %v2259_v34 = vpop.f32.mrb[34].mxu0 }
 0x2e6   : > { %v1330_v45 = vadd.f32 %v2259_v34, %v3081_v59  ;;  %v1321_v37 = vpop.f32.mrb[35].mxu0  ;;  %v1399_v22 = vmax.f32 %v1327_v30, 0.0 }
 0x2e7   : > { %v1322_v14 = vadd.f32 %v1321_v37, %v3069_v51  ;;  %v1397_v26 = vmax.f32 %v1319_v53, 0.0 }
 0x2e8   : > { %v1400_v7 = vmax.f32 %v1330_v45, 0.0 }
 0x2e9   : > { %v1398_v57 = vmax.f32 %v1322_v14, 0.0 }
 0x2ea   : > { %v1418_v18 = vpack.c.bf16 %v1400_v7, %v1399_v22 }
 0x2eb   : > { %v1417_v49 = vpack.c.bf16 %v1398_v57, %v1397_v26  ;;  %v2262_v27 = vpop.f32.mrb[36].mxu0 }
 0x2ec   : > { %v1343_v35 = vadd.f32 %v2262_v27, %v3099_v8  ;;  %v1334_v39 = vpop.f32.mrb[37].mxu0 }
 0x2ed   : > { %v1335_v55 = vadd.f32 %v1334_v39, %v3087_v63  ;;  %v2263_v40 = vpop.f32.mrb[38].mxu0  ;;  %2292 = vmatprep.mubr.bf16.mxu1 %v1417_v49 }
 0x2ee   : > { %v1346_v47 = vadd.f32 %v2263_v40, %v3105_v12  ;;  %v1337_v59 = vpop.f32.mrb[39].mxu0  ;;  %2293 = vmatmul.mubr.bf16.vlgmr.msra.gmra.mrb[52].mxu1 %v1418_v18  ;;  %v1403_v38 = vmax.f32 %v1343_v35, 0.0 }
 0x2ef   : > { %v1338_v51 = vadd.f32 %v1337_v59, %v3093_v4  ;;  %v1401_v29 = vmax.f32 %v1335_v55, 0.0 }
 0x2f0   : > { %v1404_v23 = vmax.f32 %v1346_v47, 0.0 }
 0x2f1   : > { %v1402_v19 = vmax.f32 %v1338_v51, 0.0 }
 0x2f2   : > { %v1420_v41 = vpack.c.bf16 %v1404_v23, %v1403_v38 }
 0x2f3   : > { %v1419_v33 = vpack.c.bf16 %v1402_v19, %v1401_v29  ;;  %v2266_v21 = vpop.f32.mrb[40].mxu0 }
 0x2f4   : > { %v1359_v8 = vadd.f32 %v2266_v21, %v3123_v24  ;;  %v1350_v11 = vpop.f32.mrb[41].mxu0 }
 0x2f5   : > { %v1351_v63 = vadd.f32 %v1350_v11, %v3111_v16  ;;  %v2267_v28 = vpop.f32.mrb[42].mxu0  ;;  %2296 = vmatprep.mubr.bf16.mxu1 %v1419_v33 }
 0x2f6   : > { %v1362_v12 = vadd.f32 %v2267_v28, %v3129_v1  ;;  %v1353_v6 = vpop.f32.mrb[43].mxu0  ;;  %2297 = vmatmul.mubr.bf16.gmra.mrb[56].mxu1 %v1420_v41  ;;  %v1407_v61 = vmax.f32 %v1359_v8, 0.0 }
 0x2f7   : > { %v1354_v4 = vadd.f32 %v1353_v6, %v3117_v20  ;;  %v1405_v50 = vmax.f32 %v1351_v63, 0.0 }
 0x2f8   : > { %v1408_v13 = vmax.f32 %v1362_v12, 0.0  ;;  %v3339_v12 = vld [vmem:[#allocation15_spill] sm:$0xff] }
 0x2f9   : > { %v1406_v43 = vmax.f32 %v1354_v4, 0.0 }
 0x2fa   : > { %v1422_v3 = vpack.c.bf16 %v1408_v13, %v1407_v61 }
 0x2fb   : > { %v1421_v54 = vpack.c.bf16 %v1406_v43, %v1405_v50  ;;  %v2270_v46 = vpop.f32.mrb[44].mxu0 }
 0x2fc   : > { %v1375_v24 = vadd.f32 %v2270_v46, %v3141_v25  ;;  %v1366_v10 = vpop.f32.mrb[45].mxu0 }
 0x2fd   : > { %v1367_v16 = vadd.f32 %v1366_v10, %v3135_v31  ;;  %v2271_v15 = vpop.f32.mrb[46].mxu0  ;;  %2300 = vmatprep.mubr.bf16.mxu1 %v1421_v54  ;;  %v3340_v54 = vld [vmem:[#allocation20_spill] sm:$0xff] }
 0x2fe   : > { %v1378_v1 = vadd.f32 %v2271_v15, %v3055_v42  ;;  %v1369_v2 = vpop.f32.mrb[47].mxu0  ;;  %2301 = vmatmul.mubr.bf16.gmra.mrb[60].mxu1 %v1422_v3  ;;  %v1411_v17 = vmax.f32 %v1375_v24, 0.0  ;;  %v3341_v24 = vld [vmem:[#allocation18_spill] sm:$0xff] }
 0x2ff   : > { %v1370_v20 = vadd.f32 %v1369_v2, %v3139_v36  ;;  %v1409_v32 = vmax.f32 %v1367_v16, 0.0  ;;  %v3342_v16 = vld [vmem:[#allocation19_spill] sm:$0xff]  ;;  %v3343_v2 = vld [vmem:[#allocation17_spill] sm:$0xff] }
 0x300   : > { %v1412_v30 = vmax.f32 %v1378_v1, 0.0 }
 0x301   : > { %v1410_v53 = vmax.f32 %v1370_v20, 0.0 }
 0x302   : > { %v1424_v34 = vpack.c.bf16 %v1412_v30, %v1411_v17 }
 0x303   : > { %v1423_v45 = vpack.c.bf16 %v1410_v53, %v1409_v32  ;;  %v2274_v37 = vpop.f32.mrb[48].mxu0 }
 0x304   : > { %v1391_v25 = vadd.f32 %v2274_v37, %v3071_v52  ;;  %v1382_v14 = vpop.f32.mrb[49].mxu0  ;;  %v2479_v52 = vld [vmem:[#allocation7 + $0x30] sm:$0xff]  }
 0x305   : > { %v1383_v31 = vadd.f32 %v1382_v14, %v3059_v44  ;;  %v2275_v22 = vpop.f32.mrb[50].mxu0  ;;  %2304 = vmatprep.mubr.bf16.mxu1 %v1423_v45  ;;  %2324 = vmatprep.subr.bf16.mxu0 %v2479_v52  ;;  %v2480_v44 = vld [vmem:[#allocation7 + $0x38] sm:$0xff]  }
 0x306   : > { %v1394_v42 = vadd.f32 %v2275_v22, %v3077_v56  ;;  %v1385_v7 = vpop.f32.mrb[51].mxu0  ;;  %2305 = vmatmul.mubr.bf16.gmra.mrb[64].mxu1 %v1424_v34  ;;  %v1415_v26 = vmax.f32 %v1391_v25, 0.0  ;;  %2325 = vmatpush3.bf16.msra.mxu0 %v2479_v52  ;;  %v3344_v25 = vld [vmem:[#allocation24_spill] sm:$0xff]  ;;  %v3345_v22 = vld [vmem:[#allocation22_spill] sm:$0xff] }
 0x307   : > { %v1386_v36 = vadd.f32 %v1385_v7, %v3065_v48  ;;  %v1413_v18 = vmax.f32 %v1383_v31, 0.0  ;;  %2326 = vmatprep.subr.bf16.mxu0 %v2480_v44 }
 0x308   : > { %v1416_v57 = vmax.f32 %v1394_v42, 0.0 }
 0x309   : > { %v1414_v49 = vmax.f32 %v1386_v36, 0.0  ;;  %v3346_v36 = vld [vmem:[#allocation23_spill] sm:$0xff] }
 0x30a   : > { %v1426_v27 = vpack.c.bf16 %v1416_v57, %v1415_v26  ;;  %2327 = vmatpush3.bf16.msra.mxu0 %v2480_v44 }
 0x30b   : > { %v1425_v35 = vpack.c.bf16 %v1414_v49, %v1413_v18  ;;  %v3347_v18 = vld [vmem:[#allocation21_spill] sm:$0xff] }
 0x30d   : > { %2308 = vmatprep.mubr.bf16.mxu1 %v1425_v35 }
 0x30e   : > { %2309 = vmatmul.mubr.bf16.gmra.mrb[68].mxu1 %v1426_v27 }
 0x3c1   : > { %v2294_v39 = vpop.f32.mrb[52].mxu1 }
 0x3c2   : > { %v1534_v56 = vadd.f32 %v2294_v39, %v3089_v0  ;;  %v1525_v55 = vpop.f32.mrb[53].mxu1 }
 0x3c3   : > { %v1526_v48 = vadd.f32 %v1525_v55, %v3083_v60  ;;  %v2295_v40 = vpop.f32.mrb[54].mxu1  ;;  %v3338_v60 = vld [vmem:[#allocation16_spill] sm:$0xff] }
 0x3c4   : > { %v1537_v47 = vadd.f32 %v2295_v40, %v3085_v62  ;;  %v1528_v59 = vpop.f32.mrb[55].mxu1  ;;  %v1606_v38 = vmax.f32 %v1534_v56, 0.0 }
 0x3c5   : > { %v1529_v51 = vadd.f32 %v3079_v58, %v1528_v59  ;;  %v1604_v29 = vmax.f32 %v1526_v48, 0.0  ;;  %v3348_v48 = vld [vmem:[#allocation28_spill] sm:$0xff]  ;;  %v3349_v59 = vld [vmem:[#allocation26_spill] sm:$0xff] }
 0x3c6   : > { %v1607_v23 = vmax.f32 %v1537_v47, 0.0 }
 0x3c7   : > { %v1605_v19 = vmax.f32 %v1529_v51, 0.0 }
 0x3c8   : > { %v1625_v41 = vpack.c.bf16 %v1607_v23, %v1606_v38  ;;  %v3350_v23 = vld [vmem:[#allocation27_spill] sm:$0xff] }
 0x3c9   : > { %v1624_v33 = vpack.c.bf16 %v1605_v19, %v1604_v29  ;;  %v2298_v21 = vpop.f32.mrb[56].mxu1 }
 0x3ca   : > { %v1550_v8 = vadd.f32 %v2298_v21, %v3101_v9  ;;  %v1541_v11 = vpop.f32.mrb[57].mxu1 }
 0x3cb   : > { %v1542_v0 = vadd.f32 %v1541_v11, %v3095_v5  ;;  %v2299_v63 = vpop.f32.mrb[58].mxu1  ;;  %2328 = vmatprep.mubr.bf16.mxu0 %v1624_v33 }
 0x3cc   : > { %v1553_v28 = vadd.f32 %v2299_v63, %v3338_v60  ;;  %v1544_v62 = vpop.f32.mrb[59].mxu1  ;;  %2329 = vmatmul.mubr.bf16.vlgmr.msra.gmra.mrb[52].mxu0 %v1625_v41  ;;  %v1610_v6 = vmax.f32 %v1550_v8, 0.0  ;;  %v3351_v41 = vld [vmem:[#allocation25_spill] sm:$0xff] }
 0x3cd   : > { %v1545_v58 = vadd.f32 %v3339_v12, %v1544_v62  ;;  %v1608_v61 = vmax.f32 %v1542_v0, 0.0 }
 0x3ce   : > { %v1611_v4 = vmax.f32 %v1553_v28, 0.0  ;;  %v3194_v28 = vld [vmem:[%s3297_s7] ss:$0 sm:$0xff] }
 0x3cf   : > { %v1609_v13 = vmax.f32 %v1545_v58, 0.0 }
 0x3d0   : > { %v1627_v50 = vpack.c.bf16 %v1611_v4, %v1610_v6 }
 0x3d1   : > { %v1626_v43 = vpack.c.bf16 %v1609_v13, %v1608_v61  ;;  %v2302_v3 = vpop.f32.mrb[60].mxu1 }
 0x3d2   : > { %v1566_v9 = vadd.f32 %v2302_v3, %v3340_v54  ;;  %v1557_v46 = vpop.f32.mrb[61].mxu1 }
 0x3d3   : > { %v1558_v5 = vadd.f32 %v1557_v46, %v3341_v24  ;;  %v2303_v10 = vpop.f32.mrb[62].mxu1  ;;  %2332 = vmatprep.mubr.bf16.mxu0 %v1626_v43 }
 0x3d4   : > { %v1569_v15 = vadd.f32 %v2303_v10, %v3342_v16  ;;  %v1560_v1 = vpop.f32.mrb[63].mxu1  ;;  %2333 = vmatmul.mubr.bf16.gmra.mrb[56].mxu0 %v1627_v50  ;;  %v1614_v17 = vmax.f32 %v1566_v9, 0.0 }
 0x3d5   : > { %v1561_v20 = vadd.f32 %v3343_v2, %v1560_v1  ;;  %v1612_v32 = vmax.f32 %v1558_v5, 0.0 }
 0x3d6   : > { %v1615_v30 = vmax.f32 %v1569_v15, 0.0 }
 0x3d7   : > { %v1613_v53 = vmax.f32 %v1561_v20, 0.0 }
 0x3d8   : > { %v1629_v34 = vpack.c.bf16 %v1615_v30, %v1614_v17 }
 0x3d9   : > { %v1628_v45 = vpack.c.bf16 %v1613_v53, %v1612_v32  ;;  %v2306_v37 = vpop.f32.mrb[64].mxu1 }
 0x3da   : > { %v1582_v14 = vadd.f32 %v2306_v37, %v3344_v25  ;;  %v1573_v31 = vpop.f32.mrb[65].mxu1 }
 0x3db   : > { %v1574_v42 = vadd.f32 %v1573_v31, %v3345_v22  ;;  %v2307_v7 = vpop.f32.mrb[66].mxu1  ;;  %2336 = vmatprep.mubr.bf16.mxu0 %v1628_v45 }
 0x3dc   : > { %v1585_v26 = vadd.f32 %v2307_v7, %v3346_v36  ;;  %v1576_v57 = vpop.f32.mrb[67].mxu1  ;;  %2337 = vmatmul.mubr.bf16.gmra.mrb[60].mxu0 %v1629_v34  ;;  %v1618_v27 = vmax.f32 %v1582_v14, 0.0 }
 0x3dd   : > { %v1577_v49 = vadd.f32 %v3347_v18, %v1576_v57  ;;  %v1616_v52 = vmax.f32 %v1574_v42, 0.0 }
 0x3de   : > { %v1619_v35 = vmax.f32 %v1585_v26, 0.0 }
 0x3df   : > { %v1617_v44 = vmax.f32 %v1577_v49, 0.0 }
 0x3e0   : > { %v1631_v39 = vpack.c.bf16 %v1619_v35, %v1618_v27 }
 0x3e1   : > { %v1630_v56 = vpack.c.bf16 %v1617_v44, %v1616_v52  ;;  %v2310_v55 = vpop.f32.mrb[68].mxu1 }
 0x3e2   : > { %v1598_v40 = vadd.f32 %v2310_v55, %v3348_v48  ;;  %v1589_v47 = vpop.f32.mrb[69].mxu1 }
 0x3e3   : > { %v1590_v51 = vadd.f32 %v1589_v47, %v3349_v59  ;;  %v2311_v38 = vpop.f32.mrb[70].mxu1  ;;  %2340 = vmatprep.mubr.bf16.mxu0 %v1630_v56 }
 0x3e4   : > { %v1601_v29 = vadd.f32 %v2311_v38, %v3350_v23  ;;  %v1592_v19 = vpop.f32.mrb[71].mxu1  ;;  %2341 = vmatmul.mubr.bf16.gmra.mrb[64].mxu0 %v1631_v39  ;;  %v1622_v21 = vmax.f32 %v1598_v40, 0.0 }
 0x3e5   : > { %v1593_v33 = vadd.f32 %v3351_v41, %v1592_v19  ;;  %v1620_v11 = vmax.f32 %v1590_v51, 0.0 }
 0x3e6   : > { %v1623_v8 = vmax.f32 %v1601_v29, 0.0 }
 0x3e7   : > { %v1621_v0 = vmax.f32 %v1593_v33, 0.0 }
 0x3e8   : > { %v1633_v63 = vpack.c.bf16 %v1623_v8, %v1622_v21 }
 0x3e9   : > { %v1632_v60 = vpack.c.bf16 %v1621_v0, %v1620_v11 }
 0x3eb   : > { %2344 = vmatprep.mubr.bf16.mxu0 %v1632_v60 }
 0x3ec   : > { %2345 = vmatmul.mubr.bf16.gmra.mrb[68].mxu0 %v1633_v63 }
 0x49f   : > { %v2330_v62 = vpop.f32.mrb[52].mxu0 }
 0x4a0   : > { %v1748_v12 = vadd.f32 %v2330_v62, %v3194_v28  ;;  %v1739_v58 = vpop.f32.mrb[53].mxu0 }
 0x4a1   : > { %v1740_v6 = vadd.f32 %v3194_v28, %v1739_v58  ;;  %v2331_v4 = vpop.f32.mrb[54].mxu0 }
 0x4a2   : > { %1820 = vst [vmem:[%s3198_s22 + $0x10] sm:$0xff] %v1748_v12  ;;  %v1751_v61 = vadd.f32 %v2331_v4, %v3194_v28  ;;  %v1742_v13 = vpop.f32.mrb[55].mxu0 }
 0x4a3   : > { %1818 = vst [vmem:[%s3198_s22] sm:$0xff] %v1740_v6  ;;  %v1743_v50 = vadd.f32 %v3194_v28, %v1742_v13 }
 0x4a4   : > { %1821 = vst [vmem:[%s3198_s22 + $0x18] sm:$0xff] %v1751_v61 }
 0x4a5   : > { %1819 = vst [vmem:[%s3198_s22 + $0x8] sm:$0xff] %v1743_v50 }
 0x4a7   : > { %v2334_v43 = vpop.f32.mrb[56].mxu0 }
 0x4a8   : > { %v1764_v3 = vadd.f32 %v2334_v43, %v3194_v28  ;;  %v1755_v54 = vpop.f32.mrb[57].mxu0 }
 0x4a9   : > { %v1756_v9 = vadd.f32 %v3194_v28, %v1755_v54  ;;  %v2335_v46 = vpop.f32.mrb[58].mxu0 }
 0x4aa   : > { %1824 = vst [vmem:[%s3198_s22 + $0x30] sm:$0xff] %v1764_v3  ;;  %v1767_v24 = vadd.f32 %v2335_v46, %v3194_v28  ;;  %v1758_v5 = vpop.f32.mrb[59].mxu0 }
 0x4ab   : > { %1822 = vst [vmem:[%s3198_s22 + $0x20] sm:$0xff] %v1756_v9  ;;  %v1759_v10 = vadd.f32 %v3194_v28, %v1758_v5 }
 0x4ac   : > { %1825 = vst [vmem:[%s3198_s22 + $0x38] sm:$0xff] %v1767_v24 }
 0x4ad   : > { %1823 = vst [vmem:[%s3198_s22 + $0x28] sm:$0xff] %v1759_v10 }
 0x4af   : > { %v2338_v16 = vpop.f32.mrb[60].mxu0 }
 0x4b0   : > { %v1780_v15 = vadd.f32 %v2338_v16, %v3194_v28  ;;  %v1771_v1 = vpop.f32.mrb[61].mxu0 }
 0x4b1   : > { %v1772_v2 = vadd.f32 %v3194_v28, %v1771_v1  ;;  %v2339_v20 = vpop.f32.mrb[62].mxu0 }
 0x4b2   : > { %1828 = vst [vmem:[%s3198_s22 + $0x50] sm:$0xff] %v1780_v15  ;;  %v1783_v17 = vadd.f32 %v2339_v20, %v3194_v28  ;;  %v1774_v30 = vpop.f32.mrb[63].mxu0 }
 0x4b3   : > { %1826 = vst [vmem:[%s3198_s22 + $0x40] sm:$0xff] %v1772_v2  ;;  %v1775_v32 = vadd.f32 %v3194_v28, %v1774_v30 }
 0x4b4   : > { %1829 = vst [vmem:[%s3198_s22 + $0x58] sm:$0xff] %v1783_v17 }
 0x4b5   : > { %1827 = vst [vmem:[%s3198_s22 + $0x48] sm:$0xff] %v1775_v32 }
 0x4b7   : > { %v2342_v53 = vpop.f32.mrb[64].mxu0 }
 0x4b8   : > { %v1796_v34 = vadd.f32 %v2342_v53, %v3194_v28  ;;  %v1787_v45 = vpop.f32.mrb[65].mxu0 }
 0x4b9   : > { %v1788_v37 = vadd.f32 %v3194_v28, %v1787_v45  ;;  %v2343_v25 = vpop.f32.mrb[66].mxu0 }
 0x4ba   : > { %1832 = vst [vmem:[%s3198_s22 + $0x70] sm:$0xff] %v1796_v34  ;;  %v1799_v14 = vadd.f32 %v2343_v25, %v3194_v28  ;;  %v1790_v31 = vpop.f32.mrb[67].mxu0 }
 0x4bb   : > { %1830 = vst [vmem:[%s3198_s22 + $0x60] sm:$0xff] %v1788_v37  ;;  %v1791_v22 = vadd.f32 %v3194_v28, %v1790_v31 }
 0x4bc   : > { %1833 = vst [vmem:[%s3198_s22 + $0x78] sm:$0xff] %v1799_v14 }
 0x4bd   : > { %1831 = vst [vmem:[%s3198_s22 + $0x68] sm:$0xff] %v1791_v22 }
 0x4bf   : > { %v2346_v42 = vpop.f32.mrb[68].mxu0 }
 0x4c0   : > { %v1812_v7 = vadd.f32 %v2346_v42, %v3194_v28  ;;  %v1803_v36 = vpop.f32.mrb[69].mxu0 }
 0x4c1   : > { %v1804_v26 = vadd.f32 %v3194_v28, %v1803_v36  ;;  %v2347_v57 = vpop.f32.mrb[70].mxu0 }
 0x4c2   : > { %1836 = vst [vmem:[%s3198_s22 + $0x90] sm:$0xff] %v1812_v7  ;;  %v1815_v18 = vadd.f32 %v2347_v57, %v3194_v28  ;;  %v1806_v49 = vpop.f32.mrb[71].mxu0 }
 0x4c3   : > { %1834 = vst [vmem:[%s3198_s22 + $0x80] sm:$0xff] %v1804_v26  ;;  %v1807_v27 = vadd.f32 %v3194_v28, %v1806_v49 }
 0x4c4   : > { %1837 = vst [vmem:[%s3198_s22 + $0x98] sm:$0xff] %v1815_v18 }
 0x4c5   : > { %1835 = vst [vmem:[%s3198_s22 + $0x88] sm:$0xff] %v1807_v27 }
 0x4c6   : > { %2578 = shalt.err (!%p2575_p11)
}
 0x4c7   : > { %s2579_s11 = scalar_lea.hbm %s3239_s24, 2560  ;;  %s2583_s10 = scalar_lea.hbm %s3298_s8, 5120 }
 0x4c8   : > { %p2580_p5 = scmp.ne.s32.totalorder %s3239_s24, %s2579_s11  ;;  %p2584_p9 = scmp.lt.u32.totalorder %s3239_s24, %s3298_s8 }
 0x4c9   : > { %p2585_p10 = scmp.lt.u32.totalorder %s2583_s10, %s2579_s11  ;;  %p2587_p13 = scmp.lt.u32.totalorder %s2579_s11, %s3239_s24 }
 0x4ca   : > { %p2581_p0 = pnand %p2580_p5, %p3352_p1 }
 0x4cb   : > { %p2586_p12 = por %p2585_p10, %p2584_p9 }
 0x4cc   : > { %p2582_p6 = pneg %p2581_p0 }
 0x4cd   : > { %p2588_p2 = por %p2587_p13, %p2586_p12 }
 0x4cf   : > { %p2589_p3 = pnand %p2588_p2, %p2582_p6 }
 0x4d1   : > { %2592 = shalt.err (!%p2589_p3)
}
 0x4d2   : > { %s2647_s19 = smov 128   ;;  %s2648_s22 = smov 8  }
 0x4d3   : > { %2371 = dma.vmem_to_hbm [thread:$0]  (%p3352_p1), %s3241_s14, 2560, %s3239_s24, %s3249_s9, %s2647_s19, %s2647_s19, %s2648_s22  }
 0x4d4 PF: > { %p2393_p4 = scmp.ge.s32.totalorder %s2635_s30, 2  ;;  %s1867_s23 = sand.u32 1, %s2623_s27  }
 0x4d5   : > { %p3353_p7 = scmp.ne.s32.totalorder %s3312_s16, 0  ;;  %s1868_s13 = scalar_lea.sflag [#allocation4], %s1867_s23 }
 0x4d7   : > { %p2384_p8 = pnand %p2393_p4, %p3353_p7 }
 0x4d9   : > { %2618 = dma.done.wait (!%p2384_p8), %s1868_s13, 2560  }
 0x4da   : > { %2620 = vsyncadd (!%p2384_p8), %s1868_s13, 4294964736  ;;  %s3354_s30 = sld [smem:[#allocation13_spill]]  ;;  %s3355_s5 = sld [smem:[#allocation12_spill]] }
 0x4db   : > { %s3356_s29 = sld [smem:[#allocation14_spill]]  ;;  %s3357_s27 = smov %s2627_s28 }
 0x4e0   : > { %p20_p11 = scmp.ge.s32.totalorder %s3354_s30, 4   ;;  %s3358_s28 = smov %s3355_s5 }
 0x4e2   :  { %22 = sbr.rel (!%p20_p11) target bundleno = 7 (0x7), region = 103 }
 0x4e9   :  { %1873 = vsyncpa [#allocation3], 1 }
 0x4ea   :  { %1875 = vsyncpa [#allocation3 + $0x1], 1 }
 0x4eb   :  { %1876 = vsyncpa [#allocation6], 1 }
 0x4ec   :  { %1877 = vsyncpa [#allocation4], 1 }
 0x4ed   :  { %1879 = vsyncpa [#allocation4 + $0x1], 1 }

</bundles_post_ra>
